<compile_context>
chip_gen: v7x
topology: tpu7x:2x2x1
jax: 0.10.0
libtpu: 0.0.40
codegen_flags: <defaults>
</compile_context>

<pallas_src>
import math

import jax
import jax.numpy as jnp
from jax import lax
from jax.experimental import pallas as pl
from jax.experimental.pallas import tpu as pltpu

EMBED_DIM = 128
HIDDEN_DIM = 512
NUM_HEADS = 8
NUM_LAYERS = 4
HEAD_DIM = EMBED_DIM // NUM_HEADS
LN_EPS = 1e-5
NEG_INF = -1e9


def _layernorm(x, gamma, beta):
    # x: (N, E); gamma/beta: (1, E). Biased variance, like torch.nn.LayerNorm.
    mean = jnp.mean(x, axis=-1, keepdims=True)
    var = jnp.mean(jnp.square(x - mean), axis=-1, keepdims=True)
    inv = lax.rsqrt(var + LN_EPS)
    return (x - mean) * inv * gamma + beta


def encoder_kernel(
    x_ref, mask_ref,
    wqkv_ref, bqkv_ref, wo_ref, bo_ref,
    g1_ref, be1_ref,
    w1_ref, bf1_ref, w2_ref, bf2_ref,
    g2_ref, be2_ref,
    o_ref,
    x_scr, ctx_scr,
):
    """One encoder layer per grid step; activations carried in VMEM scratch.

    x_ref:    (N, E)   N = B*S (batch folded into the matmul row dim)
    mask_ref: (N, N)   0/1 attention mask (block-diagonal across batches)
    weights:  per-layer slice (leading L axis squeezed by the BlockSpec)
    x_scr:    (N, E) f32 activation carry across layers
    ctx_scr:  (N, E) f32 per-head attention context assembly buffer
    """
    l = pl.program_id(0)

    @pl.when(l == 0)
    def _():
        x_scr[...] = x_ref[...].astype(jnp.float32)

    x = x_scr[...]                       # (N, E) f32
    mask = mask_ref[...]                 # (N, N) f32

    # ---- multi-head self attention -------------------------------------
    # Fused QKV projection; 1/sqrt(HEAD_DIM) already folded into Q columns.
    qkv = (jnp.dot(x.astype(jnp.bfloat16), wqkv_ref[...],
                   preferred_element_type=jnp.float32)
           + bqkv_ref[...])                                    # (N, 3E) f32
    q = qkv[:, :EMBED_DIM]
    k = qkv[:, EMBED_DIM:2 * EMBED_DIM]
    v = qkv[:, 2 * EMBED_DIM:]

    for h in range(NUM_HEADS):           # static unroll over heads
        lo = h * HEAD_DIM
        hi = lo + HEAD_DIM
        qh = q[:, lo:hi]                                       # (N, Dh)
        kh = k[:, lo:hi]
        vh = v[:, lo:hi]
        # q @ k^T without an explicit transpose (contract last dims).
        s = lax.dot_general(qh, kh, (((1,), (1,)), ((), ())),
                            preferred_element_type=jnp.float32)   # (N, N)
        s = jnp.where(mask == 0.0, NEG_INF, s)
        s = s - jnp.max(s, axis=-1, keepdims=True)
        e = jnp.exp(s)
        p = e * pl.reciprocal(jnp.sum(e, axis=-1, keepdims=True), approx=True)
        ctx_scr[:, lo:hi] = jnp.dot(p, vh, preferred_element_type=jnp.float32)

    # Single (N,E)@(E,E) output projection over the assembled context.
    attn = (jnp.dot(ctx_scr[...].astype(jnp.bfloat16), wo_ref[...],
                    preferred_element_type=jnp.float32)
            + bo_ref[...])

    # residual + LayerNorm 1 (dropout == identity in eval mode)
    h1 = _layernorm(x + attn, g1_ref[...], be1_ref[...])

    # ---- feed-forward ----------------------------------------------------
    f = (jnp.dot(h1.astype(jnp.bfloat16), w1_ref[...],
                 preferred_element_type=jnp.float32)
         + bf1_ref[...])
    f = jnp.maximum(f, 0.0)
    f = (jnp.dot(f.astype(jnp.bfloat16), w2_ref[...],
                 preferred_element_type=jnp.float32)
         + bf2_ref[...])

    # residual + LayerNorm 2
    x_out = _layernorm(h1 + f, g2_ref[...], be2_ref[...])
    x_scr[...] = x_out

    @pl.when(l == pl.num_programs(0) - 1)
    def _():
        o_ref[...] = x_out.astype(o_ref.dtype)


def _mask_2d(mask):
    """(B,1,S,S) 0/1 mask -> (B*S, B*S) 0/1 mask, block-diagonal in batch."""
    B, _, S, _ = mask.shape
    m = mask[:, 0].astype(jnp.float32)                            # (B,S,S)
    same_batch = jnp.eye(B, dtype=jnp.float32)[:, None, :, None]  # (B,1,B,1)
    full = m[:, :, None, :] * same_batch                          # (B,S,B,S)
    return full.reshape(B * S, B * S)


@jax.jit
def encoder_forward(x, mask, packed):
    B, S, E = x.shape
    N = B * S
    mask2d = _mask_2d(mask)

    grid_spec = pltpu.PrefetchScalarGridSpec(
        num_scalar_prefetch=0,
        grid=(NUM_LAYERS,),
        in_specs=[
            pl.BlockSpec((N, E), lambda l: (0, 0)),                     # x
            pl.BlockSpec((N, N), lambda l: (0, 0)),                     # mask
            pl.BlockSpec((None, E, 3 * E), lambda l: (l, 0, 0)),        # wqkv (bf16)
            pl.BlockSpec((None, 1, 3 * E), lambda l: (l, 0, 0)),        # bqkv
            pl.BlockSpec((None, E, E), lambda l: (l, 0, 0)),            # wo (bf16)
            pl.BlockSpec((None, 1, E), lambda l: (l, 0, 0)),            # bo
            pl.BlockSpec((None, 1, E), lambda l: (l, 0, 0)),            # g1
            pl.BlockSpec((None, 1, E), lambda l: (l, 0, 0)),            # be1
            pl.BlockSpec((None, E, HIDDEN_DIM), lambda l: (l, 0, 0)),   # w1 (bf16)
            pl.BlockSpec((None, 1, HIDDEN_DIM), lambda l: (l, 0, 0)),   # bf1
            pl.BlockSpec((None, HIDDEN_DIM, E), lambda l: (l, 0, 0)),   # w2 (bf16)
            pl.BlockSpec((None, 1, E), lambda l: (l, 0, 0)),            # bf2
            pl.BlockSpec((None, 1, E), lambda l: (l, 0, 0)),            # g2
            pl.BlockSpec((None, 1, E), lambda l: (l, 0, 0)),            # be2
        ],
        out_specs=pl.BlockSpec((N, E), lambda l: (0, 0)),
        scratch_shapes=[
            pltpu.VMEM((N, E), jnp.float32),   # activation carry
            pltpu.VMEM((N, E), jnp.float32),   # attention context assembly
        ],
    )

    out = pl.pallas_call(
        encoder_kernel,
        out_shape=jax.ShapeDtypeStruct((N, E), x.dtype),
        grid_spec=grid_spec,
        compiler_params=pltpu.CompilerParams(
            dimension_semantics=("arbitrary",),
            vmem_limit_bytes=32 * 1024 * 1024),
    )(x.reshape(N, E), mask2d, *packed)
    return out.reshape(B, S, E)


def init_layer_params(key):
    """Per-layer params. Linears: small random; LayerNorm: gamma=1, beta=0."""
    ks = jax.random.split(key, 12)

    def lin(kw, kb, fan_in, fan_out):
        bound = 1.0 / math.sqrt(fan_in)
        w = jax.random.uniform(kw, (fan_in, fan_out), jnp.float32, -bound, bound)
        b = jax.random.uniform(kb, (1, fan_out), jnp.float32, -bound, bound)
        return w, b

    wq, bq = lin(ks[0], ks[1], EMBED_DIM, EMBED_DIM)
    wk, bk = lin(ks[2], ks[3], EMBED_DIM, EMBED_DIM)
    wv, bv = lin(ks[4], ks[5], EMBED_DIM, EMBED_DIM)
    wo, bo = lin(ks[6], ks[7], EMBED_DIM, EMBED_DIM)
    g1 = jnp.ones((1, EMBED_DIM), jnp.float32)
    be1 = jnp.zeros((1, EMBED_DIM), jnp.float32)
    w1, bf1 = lin(ks[8], ks[9], EMBED_DIM, HIDDEN_DIM)
    w2, bf2 = lin(ks[10], ks[11], HIDDEN_DIM, EMBED_DIM)
    g2 = jnp.ones((1, EMBED_DIM), jnp.float32)
    be2 = jnp.zeros((1, EMBED_DIM), jnp.float32)
    return (wq, bq, wk, bk, wv, bv, wo, bo, g1, be1, w1, bf1, w2, bf2, g2, be2)


def quantize_big_weights(p):
    """Round the large weight matrices to bf16 values (kept as f32 arrays) so the
    kernel's bf16-stored weights and the f32 reference use identical values."""
    q = lambda w: w.astype(jnp.bfloat16).astype(jnp.float32)
    (wq, bq, wk, bk, wv, bv, wo, bo, g1, be1, w1, bf1, w2, bf2, g2, be2) = p
    return (q(wq), bq, q(wk), bk, q(wv), bv, q(wo), bo, g1, be1,
            q(w1), bf1, q(w2), bf2, g2, be2)


def pack_params(layer_params):
    """Stack per-layer params along a leading L axis.
    Wq|Wk|Wv fused -> (E, 3E); 1/sqrt(HEAD_DIM) folded into the Q columns
    (exact: 0.25 is a power of two); big matrices stored in bf16."""
    scale = 1.0 / math.sqrt(HEAD_DIM)

    def stack(fn, dtype=None):
        a = jnp.stack([fn(p) for p in layer_params])
        return a.astype(dtype) if dtype is not None else a

    wqkv = stack(lambda p: jnp.concatenate([p[0] * scale, p[2], p[4]], axis=1),
                 jnp.bfloat16)
    bqkv = stack(lambda p: jnp.concatenate([p[1] * scale, p[3], p[5]], axis=1))
    wo   = stack(lambda p: p[6], jnp.bfloat16)
    bo   = stack(lambda p: p[7])
    g1   = stack(lambda p: p[8])
    be1  = stack(lambda p: p[9])
    w1   = stack(lambda p: p[10], jnp.bfloat16)
    bf1  = stack(lambda p: p[11])
    w2   = stack(lambda p: p[12], jnp.bfloat16)
    bf2  = stack(lambda p: p[13])
    g2   = stack(lambda p: p[14])
    be2  = stack(lambda p: p[15])
    return (wqkv, bqkv, wo, bo, g1, be1, w1, bf1, w2, bf2, g2, be2)


def reference_forward(x, mask, layer_params):
    """Pure-JAX f32 reference mirroring the PyTorch module (eval mode)."""
    B, S, E = x.shape
    for (wq, bq, wk, bk, wv, bv, wo, bo, g1, be1,
         w1, bf1, w2, bf2, g2, be2) in layer_params:
        q = x @ wq + bq
        k = x @ wk + bk
        v = x @ wv + bv

        def split(t):
            return t.reshape(B, S, NUM_HEADS, HEAD_DIM).transpose(0, 2, 1, 3)

        qh, kh, vh = split(q), split(k), split(v)
        s = jnp.einsum("bhqd,bhkd->bhqk", qh, kh) / math.sqrt(HEAD_DIM)
        s = jnp.where(mask == 0, NEG_INF, s)
        p = jax.nn.softmax(s, axis=-1)
        a = jnp.einsum("bhqk,bhkd->bhqd", p, vh)
        a = a.transpose(0, 2, 1, 3).reshape(B, S, E)
        a = a @ wo + bo
        h1 = x + a
        mean = jnp.mean(h1, -1, keepdims=True)
        var = jnp.mean((h1 - mean) ** 2, -1, keepdims=True)
        h1 = (h1 - mean) / jnp.sqrt(var + LN_EPS) * g1 + be1
        f = jnp.maximum(h1 @ w1 + bf1, 0.0) @ w2 + bf2
        h2 = h1 + f
        mean = jnp.mean(h2, -1, keepdims=True)
        var = jnp.mean((h2 - mean) ** 2, -1, keepdims=True)
        x = (h2 - mean) / jnp.sqrt(var + LN_EPS) * g2 + be2
    return x


if __name__ == "__main__":
    B, S = 2, 8
    key = jax.random.PRNGKey(0)
    kx, kp = jax.random.split(key)

    x = jax.random.normal(kx, (B, S, EMBED_DIM), jnp.float32)

    # Padding-style mask: last two key positions of batch element 1 are masked.
    valid = jnp.ones((B, S), jnp.float32).at[1, S - 2:].set(0.0)
    mask = valid[:, None, None, :] * jnp.ones((B, 1, S, 1), jnp.float32)  # (B,1,S,S)

    layer_params = [quantize_big_weights(init_layer_params(k))
                    for k in jax.random.split(kp, NUM_LAYERS)]
    packed = pack_params(layer_params)

    out = encoder_forward(x, mask, packed)
    out = jax.block_until_ready(out)

    ref = reference_forward(x, mask, layer_params)
    assert out.shape == (B, S, EMBED_DIM)
    err = float(jnp.max(jnp.abs(out - ref)))
    # bf16 matmul operands + approx reciprocal -> relaxed parity vs f32 reference.
    assert jnp.allclose(out, ref, atol=3e-2, rtol=3e-2), err

    print("KERNEL_OK")
</pallas_src>

<mosaic_0001>
module attributes {stable_mosaic.version = 11 : i64} {
  func.func @encoder_kernel(%arg0: i32, %arg1: memref<16x128xf32, #tpu.memory_space<vmem>>, %arg2: memref<16x16xf32, #tpu.memory_space<vmem>>, %arg3: memref<1x128x384xbf16, #tpu.memory_space<vmem>>, %arg4: memref<1x1x384xf32, #tpu.memory_space<vmem>>, %arg5: memref<1x128x128xbf16, #tpu.memory_space<vmem>>, %arg6: memref<1x1x128xf32, #tpu.memory_space<vmem>>, %arg7: memref<1x1x128xf32, #tpu.memory_space<vmem>>, %arg8: memref<1x1x128xf32, #tpu.memory_space<vmem>>, %arg9: memref<1x128x512xbf16, #tpu.memory_space<vmem>>, %arg10: memref<1x1x512xf32, #tpu.memory_space<vmem>>, %arg11: memref<1x512x128xbf16, #tpu.memory_space<vmem>>, %arg12: memref<1x1x128xf32, #tpu.memory_space<vmem>>, %arg13: memref<1x1x128xf32, #tpu.memory_space<vmem>>, %arg14: memref<1x1x128xf32, #tpu.memory_space<vmem>>, %arg15: memref<16x128xf32, #tpu.memory_space<vmem>>, %arg16: memref<16x128xf32, #tpu.memory_space<vmem>>, %arg17: memref<16x128xf32, #tpu.memory_space<vmem>>) attributes {dimension_semantics = [#tpu.dimension_semantics<arbitrary>], iteration_bounds = array<i64: 4>, scalar_prefetch = 0 : i64, scratch_operands = 2 : i64, tpu.core_type = #tpu.core_type<tc>, window_params = [{pipeline_mode = #tpu.pipeline_mode<synchronous>, transform_indices = @transform_0, window_bounds = array<i64: 16, 128>}, {pipeline_mode = #tpu.pipeline_mode<synchronous>, transform_indices = @transform_1, window_bounds = array<i64: 16, 16>}, {transform_indices = @transform_2, window_bounds = array<i64: 1, 128, 384>}, {transform_indices = @transform_3, window_bounds = array<i64: 1, 1, 384>}, {transform_indices = @transform_4, window_bounds = array<i64: 1, 128, 128>}, {transform_indices = @transform_5, window_bounds = array<i64: 1, 1, 128>}, {transform_indices = @transform_6, window_bounds = array<i64: 1, 1, 128>}, {transform_indices = @transform_7, window_bounds = array<i64: 1, 1, 128>}, {transform_indices = @transform_8, window_bounds = array<i64: 1, 128, 512>}, {transform_indices = @transform_9, window_bounds = array<i64: 1, 1, 512>}, {transform_indices = @transform_10, window_bounds = array<i64: 1, 512, 128>}, {transform_indices = @transform_11, window_bounds = array<i64: 1, 1, 128>}, {transform_indices = @transform_12, window_bounds = array<i64: 1, 1, 128>}, {transform_indices = @transform_13, window_bounds = array<i64: 1, 1, 128>}, {pipeline_mode = #tpu.pipeline_mode<synchronous>, transform_indices = @transform_14, window_bounds = array<i64: 16, 128>}]} {
    %c0_i32 = arith.constant 0 : i32
    %0 = arith.cmpi eq, %arg0, %c0_i32 : i32
    %1 = arith.extui %0 : i1 to i32
    %c0_i32_0 = arith.constant 0 : i32
    %2 = arith.cmpi ne, %1, %c0_i32_0 : i32
    scf.if %2 {
      %c0_116 = arith.constant 0 : index
      %c0_117 = arith.constant 0 : index
      %261 = vector.load %arg1[%c0_116, %c0_117] : memref<16x128xf32, #tpu.memory_space<vmem>>, vector<16x128xf32>
      %c0_118 = arith.constant 0 : index
      %c0_119 = arith.constant 0 : index
      %262 = vector.load %arg16[%c0_118, %c0_119] : memref<16x128xf32, #tpu.memory_space<vmem>>, vector<16x128xf32>
      tpu.vector_store %arg16[%c0_118, %c0_119], %261 {strides = array<i32>} : memref<16x128xf32, #tpu.memory_space<vmem>>, vector<16x128xf32>,
    } else {
    }
    %c0 = arith.constant 0 : index
    %c0_1 = arith.constant 0 : index
    %3 = vector.load %arg16[%c0, %c0_1] : memref<16x128xf32, #tpu.memory_space<vmem>>, vector<16x128xf32>
    %c0_2 = arith.constant 0 : index
    %c0_3 = arith.constant 0 : index
    %4 = vector.load %arg2[%c0_2, %c0_3] : memref<16x16xf32, #tpu.memory_space<vmem>>, vector<16x16xf32>
    %5 = arith.truncf %3 : vector<16x128xf32> to vector<16x128xbf16>
    %c0_4 = arith.constant 0 : index
    %c0_5 = arith.constant 0 : index
    %c0_6 = arith.constant 0 : index
    %6 = vector.load %arg3[%c0_4, %c0_5, %c0_6] : memref<1x128x384xbf16, #tpu.memory_space<vmem>>, vector<1x128x384xbf16>
    %7 = vector.shape_cast %6 : vector<1x128x384xbf16> to vector<128x384xbf16>
    %cst = arith.constant dense<0.000000e+00> : vector<16x384xf32>
    %8 = tpu.matmul %5, %7, %cst {dimension_numbers = #tpu.dot_dimension_numbers<[1], [0], [0], [1], [0, 0, 1, 1], [], []>} : vector<16x128xbf16>, vector<128x384xbf16>, vector<16x384xf32> -> vector<16x384xf32>
    %c0_7 = arith.constant 0 : index
    %c0_8 = arith.constant 0 : index
    %c0_9 = arith.constant 0 : index
    %9 = vector.load %arg4[%c0_7, %c0_8, %c0_9] : memref<1x1x384xf32, #tpu.memory_space<vmem>>, vector<1x1x384xf32>
    %10 = vector.shape_cast %9 : vector<1x1x384xf32> to vector<1x384xf32>
    %11 = vector.broadcast %10 : vector<1x384xf32> to vector<16x384xf32>
    %12 = arith.addf %8, %11 : vector<16x384xf32>
    %13 = vector.extract_strided_slice %12 {offsets = [0, 0], sizes = [16, 128], strides = [1, 1]} : vector<16x384xf32> to vector<16x128xf32>
    %14 = vector.extract_strided_slice %12 {offsets = [0, 128], sizes = [16, 128], strides = [1, 1]} : vector<16x384xf32> to vector<16x128xf32>
    %15 = vector.extract_strided_slice %12 {offsets = [0, 256], sizes = [16, 128], strides = [1, 1]} : vector<16x384xf32> to vector<16x128xf32>
    %16 = vector.extract_strided_slice %13 {offsets = [0, 0], sizes = [16, 16], strides = [1, 1]} : vector<16x128xf32> to vector<16x16xf32>
    %17 = vector.extract_strided_slice %14 {offsets = [0, 0], sizes = [16, 16], strides = [1, 1]} : vector<16x128xf32> to vector<16x16xf32>
    %18 = vector.extract_strided_slice %15 {offsets = [0, 0], sizes = [16, 16], strides = [1, 1]} : vector<16x128xf32> to vector<16x16xf32>
    %cst_10 = arith.constant dense<0.000000e+00> : vector<16x16xf32>
    %19 = tpu.matmul %16, %17, %cst_10 {dimension_numbers = #tpu.dot_dimension_numbers<[1], [1], [0], [0], [0, 0, 1, 0], [], []>} : vector<16x16xf32>, vector<16x16xf32>, vector<16x16xf32> -> vector<16x16xf32>
    %cst_11 = arith.constant 0.000000e+00 : f32
    %20 = vector.broadcast %cst_11 : f32 to vector<16x16xf32>
    %21 = arith.cmpf oeq, %4, %20 : vector<16x16xf32>
    %cst_12 = arith.constant -1.000000e+09 : f32
    %22 = vector.broadcast %cst_12 : f32 to vector<16x16xf32>
    %23 = arith.select %21, %22, %19 : vector<16x16xi1>, vector<16x16xf32>
    %cst_13 = arith.constant dense<0xFF800000> : vector<16xf32>
    %24 = vector.multi_reduction <maximumf>, %23, %cst_13 [1] : vector<16x16xf32> to vector<16xf32>
    %25 = vector.shape_cast %24 : vector<16xf32> to vector<16x1xf32>
    %26 = vector.broadcast %25 : vector<16x1xf32> to vector<16x16xf32>
    %27 = arith.subf %23, %26 : vector<16x16xf32>
    %28 = math.exp %27 : vector<16x16xf32>
    %cst_14 = arith.constant dense<0.000000e+00> : vector<16xf32>
    %29 = vector.multi_reduction <add>, %28, %cst_14 [1] : vector<16x16xf32> to vector<16xf32>
    %30 = vector.shape_cast %29 : vector<16xf32> to vector<16x1xf32>
    %31 = tpu.reciprocal %30 {approx = true} : vector<16x1xf32> -> vector<16x1xf32>
    %32 = vector.broadcast %31 : vector<16x1xf32> to vector<16x16xf32>
    %33 = arith.mulf %28, %32 : vector<16x16xf32>
    %cst_15 = arith.constant dense<0.000000e+00> : vector<16x16xf32>
    %34 = tpu.matmul %33, %18, %cst_15 {dimension_numbers = #tpu.dot_dimension_numbers<[1], [0], [0], [1], [0, 0, 1, 1], [], []>} : vector<16x16xf32>, vector<16x16xf32>, vector<16x16xf32> -> vector<16x16xf32>
    %c0_16 = arith.constant 0 : index
    %c0_17 = arith.constant 0 : index
    %35 = vector.load %arg17[%c0_16, %c0_17] : memref<16x128xf32, #tpu.memory_space<vmem>>, vector<16x16xf32>
    tpu.vector_store %arg17[%c0_16, %c0_17], %34 {strides = array<i32>} : memref<16x128xf32, #tpu.memory_space<vmem>>, vector<16x16xf32>,
    %36 = vector.extract_strided_slice %13 {offsets = [0, 16], sizes = [16, 16], strides = [1, 1]} : vector<16x128xf32> to vector<16x16xf32>
    %37 = vector.extract_strided_slice %14 {offsets = [0, 16], sizes = [16, 16], strides = [1, 1]} : vector<16x128xf32> to vector<16x16xf32>
    %38 = vector.extract_strided_slice %15 {offsets = [0, 16], sizes = [16, 16], strides = [1, 1]} : vector<16x128xf32> to vector<16x16xf32>
    %cst_18 = arith.constant dense<0.000000e+00> : vector<16x16xf32>
    %39 = tpu.matmul %36, %37, %cst_18 {dimension_numbers = #tpu.dot_dimension_numbers<[1], [1], [0], [0], [0, 0, 1, 0], [], []>} : vector<16x16xf32>, vector<16x16xf32>, vector<16x16xf32> -> vector<16x16xf32>
    %cst_19 = arith.constant 0.000000e+00 : f32
    %40 = vector.broadcast %cst_19 : f32 to vector<16x16xf32>
    %41 = arith.cmpf oeq, %4, %40 : vector<16x16xf32>
    %cst_20 = arith.constant -1.000000e+09 : f32
    %42 = vector.broadcast %cst_20 : f32 to vector<16x16xf32>
    %43 = arith.select %41, %42, %39 : vector<16x16xi1>, vector<16x16xf32>
    %cst_21 = arith.constant dense<0xFF800000> : vector<16xf32>
    %44 = vector.multi_reduction <maximumf>, %43, %cst_21 [1] : vector<16x16xf32> to vector<16xf32>
    %45 = vector.shape_cast %44 : vector<16xf32> to vector<16x1xf32>
    %46 = vector.broadcast %45 : vector<16x1xf32> to vector<16x16xf32>
    %47 = arith.subf %43, %46 : vector<16x16xf32>
    %48 = math.exp %47 : vector<16x16xf32>
    %cst_22 = arith.constant dense<0.000000e+00> : vector<16xf32>
    %49 = vector.multi_reduction <add>, %48, %cst_22 [1] : vector<16x16xf32> to vector<16xf32>
    %50 = vector.shape_cast %49 : vector<16xf32> to vector<16x1xf32>
    %51 = tpu.reciprocal %50 {approx = true} : vector<16x1xf32> -> vector<16x1xf32>
    %52 = vector.broadcast %51 : vector<16x1xf32> to vector<16x16xf32>
    %53 = arith.mulf %48, %52 : vector<16x16xf32>
    %cst_23 = arith.constant dense<0.000000e+00> : vector<16x16xf32>
    %54 = tpu.matmul %53, %38, %cst_23 {dimension_numbers = #tpu.dot_dimension_numbers<[1], [0], [0], [1], [0, 0, 1, 1], [], []>} : vector<16x16xf32>, vector<16x16xf32>, vector<16x16xf32> -> vector<16x16xf32>
    %c0_24 = arith.constant 0 : index
    %c16 = arith.constant 16 : index
    %55 = vector.load %arg17[%c0_24, %c16] : memref<16x128xf32, #tpu.memory_space<vmem>>, vector<16x16xf32>
    tpu.vector_store %arg17[%c0_24, %c16], %54 {strides = array<i32>} : memref<16x128xf32, #tpu.memory_space<vmem>>, vector<16x16xf32>,
    %56 = vector.extract_strided_slice %13 {offsets = [0, 32], sizes = [16, 16], strides = [1, 1]} : vector<16x128xf32> to vector<16x16xf32>
    %57 = vector.extract_strided_slice %14 {offsets = [0, 32], sizes = [16, 16], strides = [1, 1]} : vector<16x128xf32> to vector<16x16xf32>
    %58 = vector.extract_strided_slice %15 {offsets = [0, 32], sizes = [16, 16], strides = [1, 1]} : vector<16x128xf32> to vector<16x16xf32>
    %cst_25 = arith.constant dense<0.000000e+00> : vector<16x16xf32>
    %59 = tpu.matmul %56, %57, %cst_25 {dimension_numbers = #tpu.dot_dimension_numbers<[1], [1], [0], [0], [0, 0, 1, 0], [], []>} : vector<16x16xf32>, vector<16x16xf32>, vector<16x16xf32> -> vector<16x16xf32>
    %cst_26 = arith.constant 0.000000e+00 : f32
    %60 = vector.broadcast %cst_26 : f32 to vector<16x16xf32>
    %61 = arith.cmpf oeq, %4, %60 : vector<16x16xf32>
    %cst_27 = arith.constant -1.000000e+09 : f32
    %62 = vector.broadcast %cst_27 : f32 to vector<16x16xf32>
    %63 = arith.select %61, %62, %59 : vector<16x16xi1>, vector<16x16xf32>
    %cst_28 = arith.constant dense<0xFF800000> : vector<16xf32>
    %64 = vector.multi_reduction <maximumf>, %63, %cst_28 [1] : vector<16x16xf32> to vector<16xf32>
    %65 = vector.shape_cast %64 : vector<16xf32> to vector<16x1xf32>
    %66 = vector.broadcast %65 : vector<16x1xf32> to vector<16x16xf32>
    %67 = arith.subf %63, %66 : vector<16x16xf32>
    %68 = math.exp %67 : vector<16x16xf32>
    %cst_29 = arith.constant dense<0.000000e+00> : vector<16xf32>
    %69 = vector.multi_reduction <add>, %68, %cst_29 [1] : vector<16x16xf32> to vector<16xf32>
    %70 = vector.shape_cast %69 : vector<16xf32> to vector<16x1xf32>
    %71 = tpu.reciprocal %70 {approx = true} : vector<16x1xf32> -> vector<16x1xf32>
    %72 = vector.broadcast %71 : vector<16x1xf32> to vector<16x16xf32>
    %73 = arith.mulf %68, %72 : vector<16x16xf32>
    %cst_30 = arith.constant dense<0.000000e+00> : vector<16x16xf32>
    %74 = tpu.matmul %73, %58, %cst_30 {dimension_numbers = #tpu.dot_dimension_numbers<[1], [0], [0], [1], [0, 0, 1, 1], [], []>} : vector<16x16xf32>, vector<16x16xf32>, vector<16x16xf32> -> vector<16x16xf32>
    %c0_31 = arith.constant 0 : index
    %c32 = arith.constant 32 : index
    %75 = vector.load %arg17[%c0_31, %c32] : memref<16x128xf32, #tpu.memory_space<vmem>>, vector<16x16xf32>
    tpu.vector_store %arg17[%c0_31, %c32], %74 {strides = array<i32>} : memref<16x128xf32, #tpu.memory_space<vmem>>, vector<16x16xf32>,
    %76 = vector.extract_strided_slice %13 {offsets = [0, 48], sizes = [16, 16], strides = [1, 1]} : vector<16x128xf32> to vector<16x16xf32>
    %77 = vector.extract_strided_slice %14 {offsets = [0, 48], sizes = [16, 16], strides = [1, 1]} : vector<16x128xf32> to vector<16x16xf32>
    %78 = vector.extract_strided_slice %15 {offsets = [0, 48], sizes = [16, 16], strides = [1, 1]} : vector<16x128xf32> to vector<16x16xf32>
    %cst_32 = arith.constant dense<0.000000e+00> : vector<16x16xf32>
    %79 = tpu.matmul %76, %77, %cst_32 {dimension_numbers = #tpu.dot_dimension_numbers<[1], [1], [0], [0], [0, 0, 1, 0], [], []>} : vector<16x16xf32>, vector<16x16xf32>, vector<16x16xf32> -> vector<16x16xf32>
    %cst_33 = arith.constant 0.000000e+00 : f32
    %80 = vector.broadcast %cst_33 : f32 to vector<16x16xf32>
    %81 = arith.cmpf oeq, %4, %80 : vector<16x16xf32>
    %cst_34 = arith.constant -1.000000e+09 : f32
    %82 = vector.broadcast %cst_34 : f32 to vector<16x16xf32>
    %83 = arith.select %81, %82, %79 : vector<16x16xi1>, vector<16x16xf32>
    %cst_35 = arith.constant dense<0xFF800000> : vector<16xf32>
    %84 = vector.multi_reduction <maximumf>, %83, %cst_35 [1] : vector<16x16xf32> to vector<16xf32>
    %85 = vector.shape_cast %84 : vector<16xf32> to vector<16x1xf32>
    %86 = vector.broadcast %85 : vector<16x1xf32> to vector<16x16xf32>
    %87 = arith.subf %83, %86 : vector<16x16xf32>
    %88 = math.exp %87 : vector<16x16xf32>
    %cst_36 = arith.constant dense<0.000000e+00> : vector<16xf32>
    %89 = vector.multi_reduction <add>, %88, %cst_36 [1] : vector<16x16xf32> to vector<16xf32>
    %90 = vector.shape_cast %89 : vector<16xf32> to vector<16x1xf32>
    %91 = tpu.reciprocal %90 {approx = true} : vector<16x1xf32> -> vector<16x1xf32>
    %92 = vector.broadcast %91 : vector<16x1xf32> to vector<16x16xf32>
    %93 = arith.mulf %88, %92 : vector<16x16xf32>
    %cst_37 = arith.constant dense<0.000000e+00> : vector<16x16xf32>
    %94 = tpu.matmul %93, %78, %cst_37 {dimension_numbers = #tpu.dot_dimension_numbers<[1], [0], [0], [1], [0, 0, 1, 1], [], []>} : vector<16x16xf32>, vector<16x16xf32>, vector<16x16xf32> -> vector<16x16xf32>
    %c0_38 = arith.constant 0 : index
    %c48 = arith.constant 48 : index
    %95 = vector.load %arg17[%c0_38, %c48] : memref<16x128xf32, #tpu.memory_space<vmem>>, vector<16x16xf32>
    tpu.vector_store %arg17[%c0_38, %c48], %94 {strides = array<i32>} : memref<16x128xf32, #tpu.memory_space<vmem>>, vector<16x16xf32>,
    %96 = vector.extract_strided_slice %13 {offsets = [0, 64], sizes = [16, 16], strides = [1, 1]} : vector<16x128xf32> to vector<16x16xf32>
    %97 = vector.extract_strided_slice %14 {offsets = [0, 64], sizes = [16, 16], strides = [1, 1]} : vector<16x128xf32> to vector<16x16xf32>
    %98 = vector.extract_strided_slice %15 {offsets = [0, 64], sizes = [16, 16], strides = [1, 1]} : vector<16x128xf32> to vector<16x16xf32>
    %cst_39 = arith.constant dense<0.000000e+00> : vector<16x16xf32>
    %99 = tpu.matmul %96, %97, %cst_39 {dimension_numbers = #tpu.dot_dimension_numbers<[1], [1], [0], [0], [0, 0, 1, 0], [], []>} : vector<16x16xf32>, vector<16x16xf32>, vector<16x16xf32> -> vector<16x16xf32>
    %cst_40 = arith.constant 0.000000e+00 : f32
    %100 = vector.broadcast %cst_40 : f32 to vector<16x16xf32>
    %101 = arith.cmpf oeq, %4, %100 : vector<16x16xf32>
    %cst_41 = arith.constant -1.000000e+09 : f32
    %102 = vector.broadcast %cst_41 : f32 to vector<16x16xf32>
    %103 = arith.select %101, %102, %99 : vector<16x16xi1>, vector<16x16xf32>
    %cst_42 = arith.constant dense<0xFF800000> : vector<16xf32>
    %104 = vector.multi_reduction <maximumf>, %103, %cst_42 [1] : vector<16x16xf32> to vector<16xf32>
    %105 = vector.shape_cast %104 : vector<16xf32> to vector<16x1xf32>
    %106 = vector.broadcast %105 : vector<16x1xf32> to vector<16x16xf32>
    %107 = arith.subf %103, %106 : vector<16x16xf32>
    %108 = math.exp %107 : vector<16x16xf32>
    %cst_43 = arith.constant dense<0.000000e+00> : vector<16xf32>
    %109 = vector.multi_reduction <add>, %108, %cst_43 [1] : vector<16x16xf32> to vector<16xf32>
    %110 = vector.shape_cast %109 : vector<16xf32> to vector<16x1xf32>
    %111 = tpu.reciprocal %110 {approx = true} : vector<16x1xf32> -> vector<16x1xf32>
    %112 = vector.broadcast %111 : vector<16x1xf32> to vector<16x16xf32>
    %113 = arith.mulf %108, %112 : vector<16x16xf32>
    %cst_44 = arith.constant dense<0.000000e+00> : vector<16x16xf32>
    %114 = tpu.matmul %113, %98, %cst_44 {dimension_numbers = #tpu.dot_dimension_numbers<[1], [0], [0], [1], [0, 0, 1, 1], [], []>} : vector<16x16xf32>, vector<16x16xf32>, vector<16x16xf32> -> vector<16x16xf32>
    %c0_45 = arith.constant 0 : index
    %c64 = arith.constant 64 : index
    %115 = vector.load %arg17[%c0_45, %c64] : memref<16x128xf32, #tpu.memory_space<vmem>>, vector<16x16xf32>
    tpu.vector_store %arg17[%c0_45, %c64], %114 {strides = array<i32>} : memref<16x128xf32, #tpu.memory_space<vmem>>, vector<16x16xf32>,
    %116 = vector.extract_strided_slice %13 {offsets = [0, 80], sizes = [16, 16], strides = [1, 1]} : vector<16x128xf32> to vector<16x16xf32>
    %117 = vector.extract_strided_slice %14 {offsets = [0, 80], sizes = [16, 16], strides = [1, 1]} : vector<16x128xf32> to vector<16x16xf32>
    %118 = vector.extract_strided_slice %15 {offsets = [0, 80], sizes = [16, 16], strides = [1, 1]} : vector<16x128xf32> to vector<16x16xf32>
    %cst_46 = arith.constant dense<0.000000e+00> : vector<16x16xf32>
    %119 = tpu.matmul %116, %117, %cst_46 {dimension_numbers = #tpu.dot_dimension_numbers<[1], [1], [0], [0], [0, 0, 1, 0], [], []>} : vector<16x16xf32>, vector<16x16xf32>, vector<16x16xf32> -> vector<16x16xf32>
    %cst_47 = arith.constant 0.000000e+00 : f32
    %120 = vector.broadcast %cst_47 : f32 to vector<16x16xf32>
    %121 = arith.cmpf oeq, %4, %120 : vector<16x16xf32>
    %cst_48 = arith.constant -1.000000e+09 : f32
    %122 = vector.broadcast %cst_48 : f32 to vector<16x16xf32>
    %123 = arith.select %121, %122, %119 : vector<16x16xi1>, vector<16x16xf32>
    %cst_49 = arith.constant dense<0xFF800000> : vector<16xf32>
    %124 = vector.multi_reduction <maximumf>, %123, %cst_49 [1] : vector<16x16xf32> to vector<16xf32>
    %125 = vector.shape_cast %124 : vector<16xf32> to vector<16x1xf32>
    %126 = vector.broadcast %125 : vector<16x1xf32> to vector<16x16xf32>
    %127 = arith.subf %123, %126 : vector<16x16xf32>
    %128 = math.exp %127 : vector<16x16xf32>
    %cst_50 = arith.constant dense<0.000000e+00> : vector<16xf32>
    %129 = vector.multi_reduction <add>, %128, %cst_50 [1] : vector<16x16xf32> to vector<16xf32>
    %130 = vector.shape_cast %129 : vector<16xf32> to vector<16x1xf32>
    %131 = tpu.reciprocal %130 {approx = true} : vector<16x1xf32> -> vector<16x1xf32>
    %132 = vector.broadcast %131 : vector<16x1xf32> to vector<16x16xf32>
    %133 = arith.mulf %128, %132 : vector<16x16xf32>
    %cst_51 = arith.constant dense<0.000000e+00> : vector<16x16xf32>
    %134 = tpu.matmul %133, %118, %cst_51 {dimension_numbers = #tpu.dot_dimension_numbers<[1], [0], [0], [1], [0, 0, 1, 1], [], []>} : vector<16x16xf32>, vector<16x16xf32>, vector<16x16xf32> -> vector<16x16xf32>
    %c0_52 = arith.constant 0 : index
    %c80 = arith.constant 80 : index
    %135 = vector.load %arg17[%c0_52, %c80] : memref<16x128xf32, #tpu.memory_space<vmem>>, vector<16x16xf32>
    tpu.vector_store %arg17[%c0_52, %c80], %134 {strides = array<i32>} : memref<16x128xf32, #tpu.memory_space<vmem>>, vector<16x16xf32>,
    %136 = vector.extract_strided_slice %13 {offsets = [0, 96], sizes = [16, 16], strides = [1, 1]} : vector<16x128xf32> to vector<16x16xf32>
    %137 = vector.extract_strided_slice %14 {offsets = [0, 96], sizes = [16, 16], strides = [1, 1]} : vector<16x128xf32> to vector<16x16xf32>
    %138 = vector.extract_strided_slice %15 {offsets = [0, 96], sizes = [16, 16], strides = [1, 1]} : vector<16x128xf32> to vector<16x16xf32>
    %cst_53 = arith.constant dense<0.000000e+00> : vector<16x16xf32>
    %139 = tpu.matmul %136, %137, %cst_53 {dimension_numbers = #tpu.dot_dimension_numbers<[1], [1], [0], [0], [0, 0, 1, 0], [], []>} : vector<16x16xf32>, vector<16x16xf32>, vector<16x16xf32> -> vector<16x16xf32>
    %cst_54 = arith.constant 0.000000e+00 : f32
    %140 = vector.broadcast %cst_54 : f32 to vector<16x16xf32>
    %141 = arith.cmpf oeq, %4, %140 : vector<16x16xf32>
    %cst_55 = arith.constant -1.000000e+09 : f32
    %142 = vector.broadcast %cst_55 : f32 to vector<16x16xf32>
    %143 = arith.select %141, %142, %139 : vector<16x16xi1>, vector<16x16xf32>
    %cst_56 = arith.constant dense<0xFF800000> : vector<16xf32>
    %144 = vector.multi_reduction <maximumf>, %143, %cst_56 [1] : vector<16x16xf32> to vector<16xf32>
    %145 = vector.shape_cast %144 : vector<16xf32> to vector<16x1xf32>
    %146 = vector.broadcast %145 : vector<16x1xf32> to vector<16x16xf32>
    %147 = arith.subf %143, %146 : vector<16x16xf32>
    %148 = math.exp %147 : vector<16x16xf32>
    %cst_57 = arith.constant dense<0.000000e+00> : vector<16xf32>
    %149 = vector.multi_reduction <add>, %148, %cst_57 [1] : vector<16x16xf32> to vector<16xf32>
    %150 = vector.shape_cast %149 : vector<16xf32> to vector<16x1xf32>
    %151 = tpu.reciprocal %150 {approx = true} : vector<16x1xf32> -> vector<16x1xf32>
    %152 = vector.broadcast %151 : vector<16x1xf32> to vector<16x16xf32>
    %153 = arith.mulf %148, %152 : vector<16x16xf32>
    %cst_58 = arith.constant dense<0.000000e+00> : vector<16x16xf32>
    %154 = tpu.matmul %153, %138, %cst_58 {dimension_numbers = #tpu.dot_dimension_numbers<[1], [0], [0], [1], [0, 0, 1, 1], [], []>} : vector<16x16xf32>, vector<16x16xf32>, vector<16x16xf32> -> vector<16x16xf32>
    %c0_59 = arith.constant 0 : index
    %c96 = arith.constant 96 : index
    %155 = vector.load %arg17[%c0_59, %c96] : memref<16x128xf32, #tpu.memory_space<vmem>>, vector<16x16xf32>
    tpu.vector_store %arg17[%c0_59, %c96], %154 {strides = array<i32>} : memref<16x128xf32, #tpu.memory_space<vmem>>, vector<16x16xf32>,
    %156 = vector.extract_strided_slice %13 {offsets = [0, 112], sizes = [16, 16], strides = [1, 1]} : vector<16x128xf32> to vector<16x16xf32>
    %157 = vector.extract_strided_slice %14 {offsets = [0, 112], sizes = [16, 16], strides = [1, 1]} : vector<16x128xf32> to vector<16x16xf32>
    %158 = vector.extract_strided_slice %15 {offsets = [0, 112], sizes = [16, 16], strides = [1, 1]} : vector<16x128xf32> to vector<16x16xf32>
    %cst_60 = arith.constant dense<0.000000e+00> : vector<16x16xf32>
    %159 = tpu.matmul %156, %157, %cst_60 {dimension_numbers = #tpu.dot_dimension_numbers<[1], [1], [0], [0], [0, 0, 1, 0], [], []>} : vector<16x16xf32>, vector<16x16xf32>, vector<16x16xf32> -> vector<16x16xf32>
    %cst_61 = arith.constant 0.000000e+00 : f32
    %160 = vector.broadcast %cst_61 : f32 to vector<16x16xf32>
    %161 = arith.cmpf oeq, %4, %160 : vector<16x16xf32>
    %cst_62 = arith.constant -1.000000e+09 : f32
    %162 = vector.broadcast %cst_62 : f32 to vector<16x16xf32>
    %163 = arith.select %161, %162, %159 : vector<16x16xi1>, vector<16x16xf32>
    %cst_63 = arith.constant dense<0xFF800000> : vector<16xf32>
    %164 = vector.multi_reduction <maximumf>, %163, %cst_63 [1] : vector<16x16xf32> to vector<16xf32>
    %165 = vector.shape_cast %164 : vector<16xf32> to vector<16x1xf32>
    %166 = vector.broadcast %165 : vector<16x1xf32> to vector<16x16xf32>
    %167 = arith.subf %163, %166 : vector<16x16xf32>
    %168 = math.exp %167 : vector<16x16xf32>
    %cst_64 = arith.constant dense<0.000000e+00> : vector<16xf32>
    %169 = vector.multi_reduction <add>, %168, %cst_64 [1] : vector<16x16xf32> to vector<16xf32>
    %170 = vector.shape_cast %169 : vector<16xf32> to vector<16x1xf32>
    %171 = tpu.reciprocal %170 {approx = true} : vector<16x1xf32> -> vector<16x1xf32>
    %172 = vector.broadcast %171 : vector<16x1xf32> to vector<16x16xf32>
    %173 = arith.mulf %168, %172 : vector<16x16xf32>
    %cst_65 = arith.constant dense<0.000000e+00> : vector<16x16xf32>
    %174 = tpu.matmul %173, %158, %cst_65 {dimension_numbers = #tpu.dot_dimension_numbers<[1], [0], [0], [1], [0, 0, 1, 1], [], []>} : vector<16x16xf32>, vector<16x16xf32>, vector<16x16xf32> -> vector<16x16xf32>
    %c0_66 = arith.constant 0 : index
    %c112 = arith.constant 112 : index
    %175 = vector.load %arg17[%c0_66, %c112] : memref<16x128xf32, #tpu.memory_space<vmem>>, vector<16x16xf32>
    tpu.vector_store %arg17[%c0_66, %c112], %174 {strides = array<i32>} : memref<16x128xf32, #tpu.memory_space<vmem>>, vector<16x16xf32>,
    %c0_67 = arith.constant 0 : index
    %c0_68 = arith.constant 0 : index
    %176 = vector.load %arg17[%c0_67, %c0_68] : memref<16x128xf32, #tpu.memory_space<vmem>>, vector<16x128xf32>
    %177 = arith.truncf %176 : vector<16x128xf32> to vector<16x128xbf16>
    %c0_69 = arith.constant 0 : index
    %c0_70 = arith.constant 0 : index
    %c0_71 = arith.constant 0 : index
    %178 = vector.load %arg5[%c0_69, %c0_70, %c0_71] : memref<1x128x128xbf16, #tpu.memory_space<vmem>>, vector<1x128x128xbf16>
    %179 = vector.shape_cast %178 : vector<1x128x128xbf16> to vector<128x128xbf16>
    %cst_72 = arith.constant dense<0.000000e+00> : vector<16x128xf32>
    %180 = tpu.matmul %177, %179, %cst_72 {dimension_numbers = #tpu.dot_dimension_numbers<[1], [0], [0], [1], [0, 0, 1, 1], [], []>} : vector<16x128xbf16>, vector<128x128xbf16>, vector<16x128xf32> -> vector<16x128xf32>
    %c0_73 = arith.constant 0 : index
    %c0_74 = arith.constant 0 : index
    %c0_75 = arith.constant 0 : index
    %181 = vector.load %arg6[%c0_73, %c0_74, %c0_75] : memref<1x1x128xf32, #tpu.memory_space<vmem>>, vector<1x1x128xf32>
    %182 = vector.shape_cast %181 : vector<1x1x128xf32> to vector<1x128xf32>
    %183 = vector.broadcast %182 : vector<1x128xf32> to vector<16x128xf32>
    %184 = arith.addf %180, %183 : vector<16x128xf32>
    %185 = arith.addf %3, %184 : vector<16x128xf32>
    %c0_76 = arith.constant 0 : index
    %c0_77 = arith.constant 0 : index
    %c0_78 = arith.constant 0 : index
    %186 = vector.load %arg7[%c0_76, %c0_77, %c0_78] : memref<1x1x128xf32, #tpu.memory_space<vmem>>, vector<1x1x128xf32>
    %187 = vector.shape_cast %186 : vector<1x1x128xf32> to vector<1x128xf32>
    %c0_79 = arith.constant 0 : index
    %c0_80 = arith.constant 0 : index
    %c0_81 = arith.constant 0 : index
    %188 = vector.load %arg8[%c0_79, %c0_80, %c0_81] : memref<1x1x128xf32, #tpu.memory_space<vmem>>, vector<1x1x128xf32>
    %189 = vector.shape_cast %188 : vector<1x1x128xf32> to vector<1x128xf32>
    %cst_82 = arith.constant dense<0.000000e+00> : vector<16xf32>
    %190 = vector.multi_reduction <add>, %185, %cst_82 [1] : vector<16x128xf32> to vector<16xf32>
    %191 = vector.shape_cast %190 : vector<16xf32> to vector<16x1xf32>
    %cst_83 = arith.constant 1.280000e+02 : f32
    %192 = vector.broadcast %cst_83 : f32 to vector<16x1xf32>
    %193 = arith.divf %191, %192 : vector<16x1xf32>
    %194 = vector.broadcast %193 : vector<16x1xf32> to vector<16x128xf32>
    %195 = arith.subf %185, %194 : vector<16x128xf32>
    %196 = arith.mulf %195, %195 : vector<16x128xf32>
    %cst_84 = arith.constant dense<0.000000e+00> : vector<16xf32>
    %197 = vector.multi_reduction <add>, %196, %cst_84 [1] : vector<16x128xf32> to vector<16xf32>
    %198 = vector.shape_cast %197 : vector<16xf32> to vector<16x1xf32>
    %cst_85 = arith.constant 1.280000e+02 : f32
    %199 = vector.broadcast %cst_85 : f32 to vector<16x1xf32>
    %200 = arith.divf %198, %199 : vector<16x1xf32>
    %cst_86 = arith.constant 9.99999974E-6 : f32
    %201 = vector.broadcast %cst_86 : f32 to vector<16x1xf32>
    %202 = arith.addf %200, %201 : vector<16x1xf32>
    %203 = math.rsqrt %202 : vector<16x1xf32>
    %204 = vector.broadcast %193 : vector<16x1xf32> to vector<16x128xf32>
    %205 = arith.subf %185, %204 : vector<16x128xf32>
    %206 = vector.broadcast %203 : vector<16x1xf32> to vector<16x128xf32>
    %207 = arith.mulf %205, %206 : vector<16x128xf32>
    %208 = vector.broadcast %187 : vector<1x128xf32> to vector<16x128xf32>
    %209 = arith.mulf %207, %208 : vector<16x128xf32>
    %210 = vector.broadcast %189 : vector<1x128xf32> to vector<16x128xf32>
    %211 = arith.addf %209, %210 : vector<16x128xf32>
    %212 = arith.truncf %211 : vector<16x128xf32> to vector<16x128xbf16>
    %c0_87 = arith.constant 0 : index
    %c0_88 = arith.constant 0 : index
    %c0_89 = arith.constant 0 : index
    %213 = vector.load %arg9[%c0_87, %c0_88, %c0_89] : memref<1x128x512xbf16, #tpu.memory_space<vmem>>, vector<1x128x512xbf16>
    %214 = vector.shape_cast %213 : vector<1x128x512xbf16> to vector<128x512xbf16>
    %cst_90 = arith.constant dense<0.000000e+00> : vector<16x512xf32>
    %215 = tpu.matmul %212, %214, %cst_90 {dimension_numbers = #tpu.dot_dimension_numbers<[1], [0], [0], [1], [0, 0, 1, 1], [], []>} : vector<16x128xbf16>, vector<128x512xbf16>, vector<16x512xf32> -> vector<16x512xf32>
    %c0_91 = arith.constant 0 : index
    %c0_92 = arith.constant 0 : index
    %c0_93 = arith.constant 0 : index
    %216 = vector.load %arg10[%c0_91, %c0_92, %c0_93] : memref<1x1x512xf32, #tpu.memory_space<vmem>>, vector<1x1x512xf32>
    %217 = vector.shape_cast %216 : vector<1x1x512xf32> to vector<1x512xf32>
    %218 = vector.broadcast %217 : vector<1x512xf32> to vector<16x512xf32>
    %219 = arith.addf %215, %218 : vector<16x512xf32>
    %cst_94 = arith.constant 0.000000e+00 : f32
    %220 = vector.broadcast %cst_94 : f32 to vector<16x512xf32>
    %221 = arith.maximumf %219, %220 : vector<16x512xf32>
    %222 = arith.truncf %221 : vector<16x512xf32> to vector<16x512xbf16>
    %c0_95 = arith.constant 0 : index
    %c0_96 = arith.constant 0 : index
    %c0_97 = arith.constant 0 : index
    %223 = vector.load %arg11[%c0_95, %c0_96, %c0_97] : memref<1x512x128xbf16, #tpu.memory_space<vmem>>, vector<1x512x128xbf16>
    %224 = vector.shape_cast %223 : vector<1x512x128xbf16> to vector<512x128xbf16>
    %cst_98 = arith.constant dense<0.000000e+00> : vector<16x128xf32>
    %225 = tpu.matmul %222, %224, %cst_98 {dimension_numbers = #tpu.dot_dimension_numbers<[1], [0], [0], [1], [0, 0, 1, 1], [], []>} : vector<16x512xbf16>, vector<512x128xbf16>, vector<16x128xf32> -> vector<16x128xf32>
    %c0_99 = arith.constant 0 : index
    %c0_100 = arith.constant 0 : index
    %c0_101 = arith.constant 0 : index
    %226 = vector.load %arg12[%c0_99, %c0_100, %c0_101] : memref<1x1x128xf32, #tpu.memory_space<vmem>>, vector<1x1x128xf32>
    %227 = vector.shape_cast %226 : vector<1x1x128xf32> to vector<1x128xf32>
    %228 = vector.broadcast %227 : vector<1x128xf32> to vector<16x128xf32>
    %229 = arith.addf %225, %228 : vector<16x128xf32>
    %230 = arith.addf %211, %229 : vector<16x128xf32>
    %c0_102 = arith.constant 0 : index
    %c0_103 = arith.constant 0 : index
    %c0_104 = arith.constant 0 : index
    %231 = vector.load %arg13[%c0_102, %c0_103, %c0_104] : memref<1x1x128xf32, #tpu.memory_space<vmem>>, vector<1x1x128xf32>
    %232 = vector.shape_cast %231 : vector<1x1x128xf32> to vector<1x128xf32>
    %c0_105 = arith.constant 0 : index
    %c0_106 = arith.constant 0 : index
    %c0_107 = arith.constant 0 : index
    %233 = vector.load %arg14[%c0_105, %c0_106, %c0_107] : memref<1x1x128xf32, #tpu.memory_space<vmem>>, vector<1x1x128xf32>
    %234 = vector.shape_cast %233 : vector<1x1x128xf32> to vector<1x128xf32>
    %cst_108 = arith.constant dense<0.000000e+00> : vector<16xf32>
    %235 = vector.multi_reduction <add>, %230, %cst_108 [1] : vector<16x128xf32> to vector<16xf32>
    %236 = vector.shape_cast %235 : vector<16xf32> to vector<16x1xf32>
    %cst_109 = arith.constant 1.280000e+02 : f32
    %237 = vector.broadcast %cst_109 : f32 to vector<16x1xf32>
    %238 = arith.divf %236, %237 : vector<16x1xf32>
    %239 = vector.broadcast %238 : vector<16x1xf32> to vector<16x128xf32>
    %240 = arith.subf %230, %239 : vector<16x128xf32>
    %241 = arith.mulf %240, %240 : vector<16x128xf32>
    %cst_110 = arith.constant dense<0.000000e+00> : vector<16xf32>
    %242 = vector.multi_reduction <add>, %241, %cst_110 [1] : vector<16x128xf32> to vector<16xf32>
    %243 = vector.shape_cast %242 : vector<16xf32> to vector<16x1xf32>
    %cst_111 = arith.constant 1.280000e+02 : f32
    %244 = vector.broadcast %cst_111 : f32 to vector<16x1xf32>
    %245 = arith.divf %243, %244 : vector<16x1xf32>
    %cst_112 = arith.constant 9.99999974E-6 : f32
    %246 = vector.broadcast %cst_112 : f32 to vector<16x1xf32>
    %247 = arith.addf %245, %246 : vector<16x1xf32>
    %248 = math.rsqrt %247 : vector<16x1xf32>
    %249 = vector.broadcast %238 : vector<16x1xf32> to vector<16x128xf32>
    %250 = arith.subf %230, %249 : vector<16x128xf32>
    %251 = vector.broadcast %248 : vector<16x1xf32> to vector<16x128xf32>
    %252 = arith.mulf %250, %251 : vector<16x128xf32>
    %253 = vector.broadcast %232 : vector<1x128xf32> to vector<16x128xf32>
    %254 = arith.mulf %252, %253 : vector<16x128xf32>
    %255 = vector.broadcast %234 : vector<1x128xf32> to vector<16x128xf32>
    %256 = arith.addf %254, %255 : vector<16x128xf32>
    %c0_113 = arith.constant 0 : index
    %c0_114 = arith.constant 0 : index
    %257 = vector.load %arg16[%c0_113, %c0_114] : memref<16x128xf32, #tpu.memory_space<vmem>>, vector<16x128xf32>
    tpu.vector_store %arg16[%c0_113, %c0_114], %256 {strides = array<i32>} : memref<16x128xf32, #tpu.memory_space<vmem>>, vector<16x128xf32>,
    %c3_i32 = arith.constant 3 : i32
    %258 = arith.cmpi eq, %arg0, %c3_i32 : i32
    %259 = arith.extui %258 : i1 to i32
    %c0_i32_115 = arith.constant 0 : i32
    %260 = arith.cmpi ne, %259, %c0_i32_115 : i32
    scf.if %260 {
      %c0_116 = arith.constant 0 : index
      %c0_117 = arith.constant 0 : index
      %261 = vector.load %arg15[%c0_116, %c0_117] : memref<16x128xf32, #tpu.memory_space<vmem>>, vector<16x128xf32>
      tpu.vector_store %arg15[%c0_116, %c0_117], %256 {strides = array<i32>} : memref<16x128xf32, #tpu.memory_space<vmem>>, vector<16x128xf32>,
    } else {
    }
    return
  }
  func.func @transform_0(%arg0: i32) -> (i32, i32) {
    %c0_i32 = arith.constant 0 : i32
    %c0_i32_0 = arith.constant 0 : i32
    %c0_i32_1 = arith.constant 0 : i32
    return %c0_i32, %c0_i32_0 : i32, i32
  }
  func.func @transform_1(%arg0: i32) -> (i32, i32) {
    %c0_i32 = arith.constant 0 : i32
    %c0_i32_0 = arith.constant 0 : i32
    %c0_i32_1 = arith.constant 0 : i32
    return %c0_i32, %c0_i32_0 : i32, i32
  }
  func.func @transform_2(%arg0: i32) -> (i32, i32, i32) {
    %c0_i32 = arith.constant 0 : i32
    %c0_i32_0 = arith.constant 0 : i32
    %c0_i32_1 = arith.constant 0 : i32
    return %arg0, %c0_i32, %c0_i32_0 : i32, i32, i32
  }
  func.func @transform_3(%arg0: i32) -> (i32, i32, i32) {
    %c0_i32 = arith.constant 0 : i32
    %c0_i32_0 = arith.constant 0 : i32
    %c0_i32_1 = arith.constant 0 : i32
    return %arg0, %c0_i32, %c0_i32_0 : i32, i32, i32
  }
  func.func @transform_4(%arg0: i32) -> (i32, i32, i32) {
    %c0_i32 = arith.constant 0 : i32
    %c0_i32_0 = arith.constant 0 : i32
    %c0_i32_1 = arith.constant 0 : i32
    return %arg0, %c0_i32, %c0_i32_0 : i32, i32, i32
  }
  func.func @transform_5(%arg0: i32) -> (i32, i32, i32) {
    %c0_i32 = arith.constant 0 : i32
    %c0_i32_0 = arith.constant 0 : i32
    %c0_i32_1 = arith.constant 0 : i32
    return %arg0, %c0_i32, %c0_i32_0 : i32, i32, i32
  }
  func.func @transform_6(%arg0: i32) -> (i32, i32, i32) {
    %c0_i32 = arith.constant 0 : i32
    %c0_i32_0 = arith.constant 0 : i32
    %c0_i32_1 = arith.constant 0 : i32
    return %arg0, %c0_i32, %c0_i32_0 : i32, i32, i32
  }
  func.func @transform_7(%arg0: i32) -> (i32, i32, i32) {
    %c0_i32 = arith.constant 0 : i32
    %c0_i32_0 = arith.constant 0 : i32
    %c0_i32_1 = arith.constant 0 : i32
    return %arg0, %c0_i32, %c0_i32_0 : i32, i32, i32
  }
  func.func @transform_8(%arg0: i32) -> (i32, i32, i32) {
    %c0_i32 = arith.constant 0 : i32
    %c0_i32_0 = arith.constant 0 : i32
    %c0_i32_1 = arith.constant 0 : i32
    return %arg0, %c0_i32, %c0_i32_0 : i32, i32, i32
  }
  func.func @transform_9(%arg0: i32) -> (i32, i32, i32) {
    %c0_i32 = arith.constant 0 : i32
    %c0_i32_0 = arith.constant 0 : i32
    %c0_i32_1 = arith.constant 0 : i32
    return %arg0, %c0_i32, %c0_i32_0 : i32, i32, i32
  }
  func.func @transform_10(%arg0: i32) -> (i32, i32, i32) {
    %c0_i32 = arith.constant 0 : i32
    %c0_i32_0 = arith.constant 0 : i32
    %c0_i32_1 = arith.constant 0 : i32
    return %arg0, %c0_i32, %c0_i32_0 : i32, i32, i32
  }
  func.func @transform_11(%arg0: i32) -> (i32, i32, i32) {
    %c0_i32 = arith.constant 0 : i32
    %c0_i32_0 = arith.constant 0 : i32
    %c0_i32_1 = arith.constant 0 : i32
    return %arg0, %c0_i32, %c0_i32_0 : i32, i32, i32
  }
  func.func @transform_12(%arg0: i32) -> (i32, i32, i32) {
    %c0_i32 = arith.constant 0 : i32
    %c0_i32_0 = arith.constant 0 : i32
    %c0_i32_1 = arith.constant 0 : i32
    return %arg0, %c0_i32, %c0_i32_0 : i32, i32, i32
  }
  func.func @transform_13(%arg0: i32) -> (i32, i32, i32) {
    %c0_i32 = arith.constant 0 : i32
    %c0_i32_0 = arith.constant 0 : i32
    %c0_i32_1 = arith.constant 0 : i32
    return %arg0, %c0_i32, %c0_i32_0 : i32, i32, i32
  }
  func.func @transform_14(%arg0: i32) -> (i32, i32) {
    %c0_i32 = arith.constant 0 : i32
    %c0_i32_0 = arith.constant 0 : i32
    %c0_i32_1 = arith.constant 0 : i32
    return %c0_i32, %c0_i32_0 : i32, i32
  }
}

</mosaic_0001>

<bundles_post_ra>
// kernel: encoder_forward.1
= control target key start
LH: loop header
LB: loop body
LE: loop exit
PB: predicated region body
PF: predicated region fallthrough
CT: control target
= control target key end

     0   :  { %s5701_s0 = inlined_call_operand.vmem [shape: f32[16,128], index: 0, kind: input, shape index: {}]   ;;  %s5702_s1 = inlined_call_operand.vmem [shape: f32[16,16], index: 1, kind: input, shape index: {}]   ;;  %s5703_s2 = inlined_call_operand.hbm [shape: bf16[4,128,384], index: 2, kind: input, shape index: {}]   ;;  %s5704_s3 = inlined_call_operand.vmem [shape: f32[4,1,384], index: 3, kind: input, shape index: {}]   ;;  %s5705_s4 = inlined_call_operand.hbm [shape: bf16[4,128,128], index: 4, kind: input, shape index: {}]   ;;  %s5706_s5 = inlined_call_operand.vmem [shape: f32[4,1,128], index: 5, kind: input, shape index: {}]   ;;  %s5707_s6 = inlined_call_operand.vmem [shape: f32[4,1,128], index: 6, kind: input, shape index: {}]   ;;  %s5708_s7 = inlined_call_operand.vmem [shape: f32[4,1,128], index: 7, kind: input, shape index: {}]   ;;  %s5709_s8 = inlined_call_operand.hbm [shape: bf16[4,128,512], index: 8, kind: input, shape index: {}]   ;;  %s5710_s9 = inlined_call_operand.vmem [shape: f32[4,1,512], index: 9, kind: input, shape index: {}]   ;;  %s5711_s10 = inlined_call_operand.hbm [shape: bf16[4,512,128], index: 10, kind: input, shape index: {}]   ;;  %s5712_s11 = inlined_call_operand.vmem [shape: f32[4,1,128], index: 11, kind: input, shape index: {}]   ;;  %s5713_s12 = inlined_call_operand.vmem [shape: f32[4,1,128], index: 12, kind: input, shape index: {}]   ;;  %s5714_s13 = inlined_call_operand.vmem [shape: f32[4,1,128], index: 13, kind: input, shape index: {}]   ;;  %s5715_s14 = inlined_call_operand.hbm [shape: f32[16,128], index: 14, kind: output, shape index: {}]  }
   0x1   :  { %5725 = sst [smem:[#allocation20_spill]] %s5701_s0 }
   0x2   :  { %5726 = sst [smem:[#allocation21_spill]] %s5702_s1 }
   0x3   :  { %5727 = sst [smem:[#allocation22_spill]] %s5703_s2 }
   0x4   :  { %5728 = sst [smem:[#allocation23_spill]] %s5705_s4 }
   0x5   :  { %5729 = sst [smem:[#allocation24_spill]] %s5709_s8 }
   0x6   :  { %5730 = sst [smem:[#allocation25_spill]] %s5711_s10 }
   0x7   :  { %5731 = sst [smem:[#allocation26_spill]] %s5714_s13 }
   0x8   :  { %5732 = sst [smem:[#allocation27_spill]] %s5715_s14 }
   0x9   :  { %19 = vsyncpa [#allocation5], 0 }
   0xa   :  { %21 = vsyncpa [#allocation5 + $0x1], 0 }
   0xb   :  { %22 = vsyncpa [#allocation8], 0 }
   0xc   :  { %24 = vsyncpa [#allocation8 + $0x1], 0 }
   0xd   :  { %25 = vsyncpa [#allocation11], 0 }
   0xe   :  { %27 = vsyncpa [#allocation11 + $0x1], 0 }
   0xf   :  { %28 = vsyncpa [#allocation6], 0  ;;  %s4917_s29 = smov 0   ;;  %s4919_s30 = smov 0  }
  0x10   :  { %s4921_s15 = smov 0   ;;  %s4923_s16 = smov 0  }
  0x11 LB: > { %5733 = sst [smem:[#allocation17_spill]] %s4813_s15  ;;  %s4936_s17 = sadd.s32 4294967295, %s4817_s16   ;;  %s4817_s16 = sphi %s4923_s16, %s5759_s16   ;;  %s4813_s15 = sphi %s4921_s15, %s5764_s15   ;;  %s4809_s30 = sphi %s4919_s30, %s5763_s30   ;;  %s4805_s29 = sphi %s4917_s29, %s5762_s29  }
  0x12   : > { %s4939_s18 = sadd.s32 1, %s4817_s16   ;;  %s83_s20 = sadd.s32 1, %s4813_s15 }
  0x13   : > { %5734 = sst [smem:[#allocation18_spill]] %s4939_s18  ;;  %s80_s19 = ssub.s32 %s4817_s16, %s4939_s18 }
  0x14   : > { %p81_p0 = scmp.eq.s32.totalorder %s80_s19, 0  ;;  %p90_p1 = scmp.ne.s32.totalorder %s4813_s15, %s4809_s30 }
  0x15   : > { %p91_p2 = scmp.eq.s32.totalorder %s4817_s16, 0  ;;  %p96_p3 = scmp.ne.s32.totalorder %s4809_s30, %s4805_s29 }
  0x16   : > { %s4949_s21 = scalar_select %p81_p0, %s4813_s15, %s83_s20  }
  0x17   : > { %p92_p4 = por %p91_p2, %p90_p1  ;;  %p97_p5 = scmp.eq.s32.totalorder %s4936_s17, 0 }
  0x18   : > { %5735 = sst [smem:[#allocation19_spill]] %s4949_s21  ;;  %p4307_p6 = scmp.lt.s32.totalorder %s4817_s16, 4 }
  0x19   : > { %p4953_p7 = por %p97_p5, %p96_p3  ;;  %s4958_s23 = sand.u32 1, %s4813_s15  }
  0x1a   : > { %p4960_p8 = pnand %p4307_p6, %p92_p4  ;;  %s461_s25 = sand.u32 1, %s4817_s16  }
  0x1b   : > { %s5736_s22 = scalar_select %p4953_p7, 1, 0 }
  0x1c   : > { %s3747_s26 = sshll.u32 %s4958_s23, 6  ;;  %s3917_s27 = sshll.u32 %s4817_s16, 10 }
  0x1d   : > { %s465_s28 = scalar_lea.vmem [#allocation7], %s3747_s26  ;;  %s5738_s4 = sld [smem:[#allocation23_spill]] }
  0x1e   : > { %s472_s29 = sshll.u32 %s465_s28, 4  ;;  %s4974_s15 = scalar_lea.sflag [#allocation8], %s461_s25  ;;  %s4972_s29 = int_to_ptr.vmem [resolvable:$true] %s472_s29 }
  0x1f   : > { %p4980_p10 = pneg %p4960_p8 }
  0x23   : > { %s4970_s21 = scalar_lea.hbm %s5738_s4, %s3917_s27  ;;  %s4630_s28 = scalar_lea.hbm %s5738_s4, 4096 }
  0x24   : > { %s4625_s18 = scalar_lea.hbm %s4970_s21, 1024  ;;  %p4631_p13 = scmp.lt.u32.totalorder %s4970_s21, %s5738_s4 }
  0x25   : > { %p4626_p9 = scmp.ne.s32.totalorder %s4970_s21, %s4625_s18  ;;  %p4632_p0 = scmp.lt.u32.totalorder %s4630_s28, %s4625_s18 }
  0x26   : > { %p4634_p2 = scmp.lt.u32.totalorder %s4625_s18, %s4970_s21 }
  0x27   : > { %p4628_p11 = pnand %p4980_p10, %p4626_p9  ;;  %p4633_p1 = por %p4632_p0, %p4631_p13 }
  0x29   : > { %p4629_p12 = pneg %p4628_p11  ;;  %p4635_p3 = por %p4634_p2, %p4633_p1 }
  0x2b   : > { %p4636_p4 = pnand %p4635_p3, %p4629_p12 }
  0x2d   : > { %4639 = shalt.err (!%p4636_p4)
}
  0x2e   : > { %s4640_s25 = scalar_lea.vmem %s4972_s29, 1024  ;;  %s4819_s26 = smov [#allocation7]  }
  0x2f   : > { %p4641_p5 = scmp.ne.s32.totalorder %s4972_s29, %s4640_s25  ;;  %s4645_s27 = sshll.u32 %s4819_s26, 4  ;;  %s4646_s27 = int_to_ptr.vmem [resolvable:$false] %s4645_s27 }
  0x30   : > { %s4647_s19 = scalar_lea.vmem %s4646_s27, 2048  ;;  %p4648_p11 = scmp.lt.s32.totalorder %s4972_s29, %s4646_s27 }
  0x31   : > { %p4643_p6 = pnand %p4641_p5, %p4980_p10  ;;  %p4649_p7 = scmp.lt.s32.totalorder %s4647_s19, %s4640_s25 }
  0x33   : > { %p4644_p9 = pneg %p4643_p6  ;;  %p4650_p13 = por %p4649_p7, %p4648_p11 }
  0x35   : > { %p4651_p0 = pnand %p4650_p13, %p4644_p9 }
  0x37   : > { %4654 = shalt.err (!%p4651_p0)
}
  0x38   : > { %s5723_s18 = smov 64   ;;  %s5724_s28 = smov 4  }
  0x39   : > { %4300 = dma.hbm_to_vmem [thread:$0]  (!%p4960_p8), %s4970_s21, 1024, %s4972_s29, %s4974_s15, %s5723_s18, %s5723_s18, %s5724_s28  }
  0x3a   : > { %p3756_p7 = scmp.ge.s32.totalorder %s4817_s16, 1  ;;  %p565_p12 = scmp.lt.s32.totalorder %s4817_s16, 5 }
  0x3b   : > { %s4278_s20 = smul.u32 192, %s4958_s23  ;;  %s5741_s2 = sld [smem:[#allocation22_spill]] }
  0x3c   : > { %p5010_p1 = pnand %p3756_p7, %p565_p12  ;;  %s4279_s26 = smul.u32 3072, %s4817_s16 }
  0x3d   : > { %s437_s1 = scalar_lea.vmem [#allocation4], %s4278_s20  ;;  %s434_s21 = scalar_lea.sflag [#allocation5], %s4958_s23 }
  0x3e   : > { %s5740_s25 = scalar_select %p5010_p1, 1, 0 }
  0x3f   : > { %s444_s0 = sshll.u32 %s437_s1, 4  ;;  %s5020_s0 = int_to_ptr.vmem [resolvable:$true] %s444_s0 }
  0x41   : > { %s5018_s4 = scalar_lea.hbm %s5741_s2, %s4279_s26  ;;  %s4660_s27 = scalar_lea.hbm %s5741_s2, 12288 }
  0x42   : > { %s4655_s29 = scalar_lea.hbm %s5018_s4, 3072  ;;  %p4661_p5 = scmp.lt.u32.totalorder %s5018_s4, %s5741_s2 }
  0x43   : > { %p4656_p2 = scmp.ne.s32.totalorder %s5018_s4, %s4655_s29  ;;  %p4662_p6 = scmp.lt.u32.totalorder %s4660_s27, %s4655_s29 }
  0x44   : > { %p4664_p11 = scmp.lt.u32.totalorder %s4655_s29, %s5018_s4 }
  0x45   : > { %p4658_p3 = pnand %p4656_p2, %p4980_p10  ;;  %p4663_p9 = por %p4662_p6, %p4661_p5 }
  0x47   : > { %p4659_p4 = pneg %p4658_p3  ;;  %p4665_p13 = por %p4664_p11, %p4663_p9 }
  0x49   : > { %p4666_p0 = pnand %p4665_p13, %p4659_p4 }
  0x4b   : > { %4669 = shalt.err (!%p4666_p0)
}
  0x4c   : > { %s4670_s1 = scalar_lea.vmem %s5020_s0, 3072  ;;  %s4822_s18 = smov [#allocation4]  }
  0x4d   : > { %p4671_p7 = scmp.ne.s32.totalorder %s5020_s0, %s4670_s1  ;;  %s4675_s28 = sshll.u32 %s4822_s18, 4  ;;  %s4676_s28 = int_to_ptr.vmem [resolvable:$false] %s4675_s28 }
  0x4e   : > { %s4677_s20 = scalar_lea.vmem %s4676_s28, 6144  ;;  %p4678_p3 = scmp.lt.s32.totalorder %s5020_s0, %s4676_s28 }
  0x4f   : > { %p4673_p12 = pnand %p4671_p7, %p4980_p10  ;;  %p4679_p1 = scmp.lt.s32.totalorder %s4677_s20, %s4670_s1 }
  0x51   : > { %p4674_p2 = pneg %p4673_p12  ;;  %p4680_p5 = por %p4679_p1, %p4678_p3 }
  0x53   : > { %p4681_p6 = pnand %p4680_p5, %p4674_p2 }
  0x55   : > { %4684 = shalt.err (!%p4681_p6)
}
  0x56   : > { %s4823_s29 = smov 192   ;;  %s4824_s27 = smov 12  }
  0x57   : > { %4297 = dma.hbm_to_vmem [thread:$0]  (!%p4960_p8), %s5018_s4, 3072, %s5020_s0, %s434_s21, %s4823_s29, %s4823_s29, %s4824_s27  }
  0x58   : > { %s3750_s26 = sshll.u32 %s4958_s23, 8  ;;  %s3918_s19 = sshll.u32 %s4817_s16, 12 }
  0x59   : > { %s5742_s8 = sld [smem:[#allocation24_spill]]  ;;  %s504_s20 = scalar_lea.vmem [#allocation9], %s3750_s26 }
  0x5a   : > { %s511_s2 = sshll.u32 %s504_s20, 4  ;;  %s5057_s2 = int_to_ptr.vmem [resolvable:$true] %s511_s2 }
  0x5f   : > { %s5053_s28 = scalar_lea.hbm %s5742_s8, %s3918_s19  ;;  %s4690_s21 = scalar_lea.hbm %s5742_s8, 16384 }
  0x60   : > { %s4685_s13 = scalar_lea.hbm %s5053_s28, 4096  ;;  %p4691_p11 = scmp.lt.u32.totalorder %s5053_s28, %s5742_s8 }
  0x61   : > { %p4686_p1 = scmp.ne.s32.totalorder %s5053_s28, %s4685_s13  ;;  %p4692_p13 = scmp.lt.u32.totalorder %s4690_s21, %s4685_s13 }
  0x62   : > { %p4694_p7 = scmp.lt.u32.totalorder %s4685_s13, %s5053_s28 }
  0x63   : > { %p4688_p4 = pnand %p4686_p1, %p4980_p10  ;;  %p4693_p0 = por %p4692_p13, %p4691_p11 }
  0x65   : > { %p4689_p9 = pneg %p4688_p4  ;;  %p4695_p12 = por %p4694_p7, %p4693_p0 }
  0x67   : > { %p4696_p2 = pnand %p4695_p12, %p4689_p9 }
  0x69   : > { %4699 = shalt.err (!%p4696_p2)
}
  0x6a   : > { %s4700_s1 = scalar_lea.vmem %s5057_s2, 4096  ;;  %s4825_s18 = smov [#allocation9]  }
  0x6b   : > { %p4701_p3 = scmp.ne.s32.totalorder %s5057_s2, %s4700_s1  ;;  %s4705_s20 = sshll.u32 %s4825_s18, 4  ;;  %s4706_s20 = int_to_ptr.vmem [resolvable:$false] %s4705_s20 }
  0x6c   : > { %s4707_s0 = scalar_lea.vmem %s4706_s20, 8192  ;;  %p4708_p1 = scmp.lt.s32.totalorder %s5057_s2, %s4706_s20 }
  0x6d   : > { %p4703_p5 = pnand %p4701_p3, %p4980_p10  ;;  %p4709_p4 = scmp.lt.s32.totalorder %s4707_s0, %s4700_s1 }
  0x6f   : > { %p4704_p6 = pneg %p4703_p5  ;;  %p4710_p11 = por %p4709_p4, %p4708_p1 }
  0x71   : > { %p4711_p13 = pnand %p4710_p11, %p4704_p6 }
  0x73   : > { %4714 = shalt.err (!%p4711_p13)
}
  0x74   : > { %s4826_s13 = smov 256   ;;  %s4827_s4 = smov 16  }
  0x75   : > { %4303 = dma.hbm_to_vmem [thread:$0]  (!%p4960_p8), %s5053_s28, 4096, %s5057_s2, %s4974_s15, %s4826_s13, %s4826_s13, %s4827_s4  }
  0x76   : > { %s5743_s10 = sld [smem:[#allocation25_spill]]  ;;  %s532_s1 = scalar_lea.vmem [#allocation10], %s3750_s26 }
  0x77   : > { %s539_s18 = sshll.u32 %s532_s1, 4  ;;  %s529_s20 = scalar_lea.sflag [#allocation11], %s4958_s23  ;;  %s5090_s18 = int_to_ptr.vmem [resolvable:$true] %s539_s18 }
  0x7c   : > { %s5086_s27 = scalar_lea.hbm %s5743_s10, %s3918_s19  ;;  %s4720_s16 = scalar_lea.hbm %s5743_s10, 16384 }
  0x7d   : > { %s4715_s0 = scalar_lea.hbm %s5086_s27, 4096  ;;  %p4721_p12 = scmp.lt.u32.totalorder %s5086_s27, %s5743_s10 }
  0x7e   : > { %p4716_p9 = scmp.ne.s32.totalorder %s5086_s27, %s4715_s0  ;;  %p4722_p2 = scmp.lt.u32.totalorder %s4720_s16, %s4715_s0 }
  0x7f   : > { %p4724_p5 = scmp.lt.u32.totalorder %s4715_s0, %s5086_s27 }
  0x80   : > { %p4718_p0 = pnand %p4716_p9, %p4980_p10  ;;  %p4723_p3 = por %p4722_p2, %p4721_p12 }
  0x82   : > { %p4719_p7 = pneg %p4718_p0  ;;  %p4725_p6 = por %p4724_p5, %p4723_p3 }
  0x84   : > { %p4726_p1 = pnand %p4725_p6, %p4719_p7 }
  0x86   : > { %4729 = shalt.err (!%p4726_p1)
}
  0x87   : > { %s4730_s26 = scalar_lea.vmem %s5090_s18, 4096  ;;  %s4828_s13 = smov [#allocation10]  }
  0x88   : > { %p4731_p4 = scmp.ne.s32.totalorder %s5090_s18, %s4730_s26  ;;  %s4735_s4 = sshll.u32 %s4828_s13, 4  ;;  %s4736_s4 = int_to_ptr.vmem [resolvable:$false] %s4735_s4 }
  0x89   : > { %s4737_s21 = scalar_lea.vmem %s4736_s4, 8192  ;;  %p4738_p9 = scmp.lt.s32.totalorder %s5090_s18, %s4736_s4 }
  0x8a   : > { %p4733_p11 = pnand %p4731_p4, %p4980_p10  ;;  %p4739_p0 = scmp.lt.s32.totalorder %s4737_s21, %s4730_s26 }
  0x8c   : > { %p4734_p13 = pneg %p4733_p11  ;;  %p4740_p12 = por %p4739_p0, %p4738_p9 }
  0x8e   : > { %p4741_p2 = pnand %p4740_p12, %p4734_p13 }
  0x90   : > { %4744 = shalt.err (!%p4741_p2)
}
  0x91   : > { %s5744_s29 = smov 4   ;;  %s5745_s1 = smov 64  }
  0x92   : > { %4306 = dma.hbm_to_vmem [thread:$0]  (!%p4960_p8), %s5086_s27, 4096, %s5090_s18, %s529_s20, %s5745_s1, %s5745_s1, %s5744_s29  }
  0x93   : > { %p5746_p10 = scmp.ne.s32.totalorder %s5740_s25, 0 }
  0x94   : > { %s571_s14 = sand.u32 (!%p5746_p10), 1, %s4809_s30   ;;  %p5747_p7 = scmp.ne.s32.totalorder (!%p5746_p10), %s5736_s22, 0 }
  0x95   : > { %569 = sbr.rel (%p5746_p10) target bundleno = 5886 (0x16fe), region = 76  ;;  %s572_s2 = scalar_lea.sflag (!%p5746_p10), [#allocation5], %s571_s14 }
  0x96   : > { %s4280_s0 = smul.u32 (!%p5746_p10), 192, %s571_s14 }
  0x98   : > { %s5122_s15 = scalar_lea.vmem (!%p5746_p10), [#allocation4], %s4280_s0 }
  0x9c   : > { %4788 = dma.done.wait (%p5747_p7), %s572_s2, 3072  }
  0x9d   : > { %4790 = vsyncadd (%p5747_p7), %s572_s2, 4294964224  ;;  %s580_s23 = sand.u32 1, %s4936_s17   ;;  %s3757_s24 = sshll.u32 %s571_s14, 6 }
  0x9e   : > { %s581_s27 = scalar_lea.sflag [#allocation8], %s580_s23  ;;  %s5129_s18 = scalar_lea.vmem [#allocation7], %s3757_s24 }
  0x9f   : > { %4792 = dma.done.wait (%p5747_p7), %s581_s27, 5120  }
  0xa0   : > { %4794 = vsyncadd (%p5747_p7), %s581_s27, 4294962176  ;;  %s3758_s25 = sshll.u32 %s571_s14, 8  ;;  %s599_s16 = scalar_lea.sflag [#allocation11], %s571_s14 }
  0xa1   : > { %s5135_s20 = scalar_lea.vmem [#allocation9], %s3758_s25  ;;  %s5137_s19 = scalar_lea.vmem [#allocation10], %s3758_s25 }
  0xa2   : > { %4796 = dma.done.wait (%p5747_p7), %s599_s16, 4096  }
  0xa3   : > { %4798 = vsyncadd (%p5747_p7), %s599_s16, 4294963200  ;;  %p683_p8 = scmp.lt.s32.totalorder %s4936_s17, 3  ;;  %s5748_s21 = sld [smem:[#allocation26_spill]] }
  0xa4   : > { %p3761_p3 = scmp.ne.s32.totalorder %s4936_s17, 0 }
  0xa5   : > { %s5145_s28 = scalar_select %p683_p8, %s4936_s17, 3 }
  0xa6   : > { %713 = sbr.rel (%p3761_p3) target bundleno = 174 (0xae), region = 96  ;;  %s5749_s8 = sld [smem:[#allocation20_spill]] (!%p3761_p3) }
  0xa7   : > { %s4281_s26 = smul.u32 3, %s5145_s28  ;;  %s3760_s25 = sshll.u32 %s5145_s28, 2 }
  0xa8   : > { %s5169_s10 = scalar_lea.vmem %s5710_s9, %s3760_s25  ;;  %s702_s22 = scalar_lea.vmem %s5712_s11, %s5145_s28 }
  0xa9   : > { %s5163_s27 = scalar_lea.vmem %s5704_s3, %s4281_s26  ;;  %s705_s14 = scalar_lea.vmem %s5713_s12, %s5145_s28 }
  0xaa   : > { %s708_s23 = scalar_lea.vmem %s5748_s21, %s5145_s28 }
  0xac   : > { %v714_v0 = vld [vmem:[%s5749_s8] sm:$0xff] (!%p3761_p3)  ;;  %v715_v1 = vld [vmem:[%s5749_s8 + $0x8] sm:$0xff] (!%p3761_p3) }
  0xad   : > { %716 = vst [vmem:[#allocation2] sm:$0xff] %v714_v0  ;;  %717 = vst [vmem:[#allocation2 + $0x8] sm:$0xff] %v715_v1 }
  0xae PF: > { %v4431_v2 = vld [vmem:[%s5122_s15 + $0x4] ss:$12 sps:$4 sm:$0xff]   ;;  %v4433_v3 = vld [vmem:[%s5122_s15] ss:$12 sps:$4 sm:$0xff]   ;;  %v4829_v4 = vmov 0   ;;  %v757_v22 = vlaneseq  ;;  %v4830_v29 = vmov 0.0   ;;  %s5754_s2 = scalar_lea.vmem %s5707_s6, %s5145_s28  ;;  %s5755_s29 = scalar_lea.vmem %s5708_s7, %s5145_s28 }
  0xaf   : > { %932 = vmatprep.mubr.bf16.mxu0 %v4829_v4  ;;  %900 = vmatprep.subr.bf16.mxu0 %v4431_v2  ;;  %v4434_v5 = vld [vmem:[%s5122_s15 + $0x1c] ss:$12 sps:$4 sm:$0xff]   ;;  %v4436_v6 = vld [vmem:[%s5122_s15 + $0x18] ss:$12 sps:$4 sm:$0xff]   ;;  %v4437_v7 = vld [vmem:[%s5122_s15 + $0x34] ss:$12 sps:$4 sm:$0xff]  }
  0xb0   : > { %901 = vmatpush1.bf16.msra.mxu0 %v4433_v3  ;;  %v4439_v8 = vld [vmem:[%s5122_s15 + $0x30] ss:$12 sps:$4 sm:$0xff]   ;;  %v4440_v9 = vld [vmem:[%s5122_s15 + $0x4c] ss:$12 sps:$4 sm:$0xff]   ;;  %v4442_v10 = vld [vmem:[%s5122_s15 + $0x48] ss:$12 sps:$4 sm:$0xff]   ;;  %4046 = vmatprep.subr.bf16.mxu1 %v4830_v29 }
  0xb1   : > { %902 = vmatprep.subr.bf16.mxu0 %v4434_v5  ;;  %v4443_v11 = vld [vmem:[%s5122_s15 + $0x64] ss:$12 sps:$4 sm:$0xff]   ;;  %v4445_v12 = vld [vmem:[%s5122_s15 + $0x60] ss:$12 sps:$4 sm:$0xff]   ;;  %v4446_v13 = vld [vmem:[%s5122_s15 + $0x7c] ss:$12 sps:$4 sm:$0xff]  }
  0xb2   : > { %v4448_v14 = vld [vmem:[%s5122_s15 + $0x78] ss:$12 sps:$4 sm:$0xff]   ;;  %v4449_v15 = vld [vmem:[%s5122_s15 + $0x94] ss:$12 sps:$4 sm:$0xff]   ;;  %v4451_v16 = vld [vmem:[%s5122_s15 + $0x90] ss:$12 sps:$4 sm:$0xff]  }
  0xb3   : > { %v4452_v17 = vld [vmem:[%s5122_s15 + $0xac] ss:$12 sps:$4 sm:$0xff]   ;;  %v4454_v18 = vld [vmem:[%s5122_s15 + $0xa8] ss:$12 sps:$4 sm:$0xff]   ;;  %v5207_v23 = vshrl.u32 %v757_v22, 7  ;;  %vm4831_vm0 = vmmov 0  }
  0xb4   : > { %903 = vmatpush1.bf16.msra.mxu0 %v4436_v6  ;;  %v718_v19 = vld [vmem:[#allocation2] sm:$0xff]  ;;  %v719_v20 = vld [vmem:[#allocation2 + $0x8] sm:$0xff]  ;;  %4062 = vmatprep.mubr.msk.bf16.mxu1 %vm4831_vm0, %v4830_v29  ;;  %vm984_vm1 = vcmask 130048   ;;  %s4832_s21 = smov 96   ;;  %v4458_v43 = vld [vmem:[%s5122_s15 + $0x50] ss:$12 sps:$4 sm:$0xff]  }
  0xb5   : > { %904 = vmatprep.subr.bf16.mxu0 %v4437_v7  ;;  %v722_v21 = vpack.c.bf16 %v719_v20, %v718_v19  ;;  %v759_v24 = vsub.s32 0, %v5207_v23  ;;  %v5211_v25 = vld [vmem:[%s5163_s27] sm:$0x7]  ;;  %v763_v26 = vsub.s32 1, %v5207_v23  ;;  %v4455_v28 = vld [vmem:[%s5122_s15 + $0x8] ss:$12 sps:$4 sm:$0xff]   ;;  %vm5232_vm2 = vmpackc.low %vm984_vm1, %vm984_vm1 }
  0xb6   : > { %4047 = vmatpush3.bf16.msra.mxu1 %v4455_v28  ;;  %v4456_v32 = vld [vmem:[%s5122_s15 + $0x20] ss:$12 sps:$4 sm:$0xff]   ;;  %v4457_v40 = vld [vmem:[%s5122_s15 + $0x38] ss:$12 sps:$4 sm:$0xff]   ;;  %s4833_s1 = smov 112   ;;  %s5752_s13 = sld [smem:[#allocation21_spill]] }
  0xb7   : > { %v760_v27 = vrot.slane %v5211_v25, %v759_v24  ;;  %v764_v31 = vrot.slane %v5211_v25, %v763_v26  ;;  %4048 = vmatprep.subr.bf16.mxu1 %v4830_v29  ;;  %v4459_v44 = vld [vmem:[%s5122_s15 + $0x68] ss:$12 sps:$4 sm:$0xff]   ;;  %v4460_v46 = vld [vmem:[%s5122_s15 + $0x80] ss:$12 sps:$4 sm:$0xff]   ;;  %v4461_v47 = vld [vmem:[%s5122_s15 + $0x98] ss:$12 sps:$4 sm:$0xff]  }
  0xb8   : > { %905 = vmatpush1.bf16.msra.mxu0 %v4439_v8  ;;  %v4462_v48 = vld [vmem:[%s5122_s15 + $0xb0] ss:$12 sps:$4 sm:$0xff]   ;;  %v767_v57 = vsub.s32 2, %v5207_v23  ;;  %s4834_s15 = smov 80   ;;  %s4835_s0 = smov 64   ;;  %vm1393_vm5 = vcmask 261248  }
  0xb9   : > { %906 = vmatprep.subr.bf16.mxu0 %v4440_v9  ;;  %s4836_s26 = smov 48   ;;  %s4837_s24 = smov 32   ;;  %vm1606_vm6 = vcmask 392448   ;;  %vm1819_vm7 = vcmask 523648   ;;  %vm2032_vm8 = vcmask 654848   ;;  %vm2245_vm9 = vcmask 786048  }
  0xba   : > { %4049 = vmatpush3.bf16.msra.mxu1 %v4456_v32  ;;  %v768_v59 = vrot.slane %v5211_v25, %v767_v57  ;;  %s4838_s25 = smov 16   ;;  %vm2458_vm10 = vcmask 917248   ;;  %vm2671_vm11 = vcmask 1048448   ;;  %p3912_p5 = scmp.ne.s32.totalorder %s4936_s17, 3 }
  0xbb   : > { %4050 = vmatprep.subr.bf16.mxu1 %v4830_v29 }
  0xbc   : > { %907 = vmatpush1.bf16.msra.mxu0 %v4442_v10  ;;  %v5265_v49 = vld [vmem:[%s5752_s13] sm:$0xff]  ;;  %v5270_v50 = vld [vmem:[%s5752_s13 + $0x8] sm:$0xff] }
  0xbd   : > { %908 = vmatprep.subr.bf16.mxu0 %v4443_v11  ;;  %vm1072_vm3 = vcmp.eq.f32.partialorder %v5265_v49, 0.0  ;;  %vm1073_vm4 = vcmp.eq.f32.partialorder %v5270_v50, 0.0 }
  0xbe   : > { %4051 = vmatpush3.bf16.msra.mxu1 %v4457_v40 }
  0xbf   : > { %4052 = vmatprep.subr.bf16.mxu1 %v4830_v29 }
  0xc0   : > { %909 = vmatpush1.bf16.msra.mxu0 %v4445_v12 }
  0xc1   : > { %910 = vmatprep.subr.bf16.mxu0 %v4446_v13 }
  0xc2   : > { %4053 = vmatpush3.bf16.msra.mxu1 %v4458_v43 }
  0xc3   : > { %4054 = vmatprep.subr.bf16.mxu1 %v4830_v29 }
  0xc4   : > { %911 = vmatpush1.bf16.msra.mxu0 %v4448_v14 }
  0xc5   : > { %912 = vmatprep.subr.bf16.mxu0 %v4449_v15 }
  0xc6   : > { %4055 = vmatpush3.bf16.msra.mxu1 %v4459_v44 }
  0xc7   : > { %4056 = vmatprep.subr.bf16.mxu1 %v4830_v29 }
  0xc8   : > { %913 = vmatpush1.bf16.msra.mxu0 %v4451_v16 }
  0xc9   : > { %914 = vmatprep.subr.bf16.mxu0 %v4452_v17 }
  0xca   : > { %4057 = vmatpush3.bf16.msra.mxu1 %v4460_v46 }
  0xcb   : > { %4058 = vmatprep.subr.bf16.mxu1 %v4830_v29 }
  0xcc   : > { %915 = vmatpush1.bf16.msra.mxu0 %v4454_v18 }
  0xce   : > { %4059 = vmatpush3.bf16.msra.mxu1 %v4461_v47 }
  0xcf   : > { %933 = vmatmul.mubr.bf16.vlgmr.msra.gmra.mrb[0].mxu0 %v722_v21  ;;  %4060 = vmatprep.subr.bf16.mxu1 %v4830_v29 }
  0xd2   : > { %4061 = vmatpush3.bf16.msra.mxu1 %v4462_v48 }
  0xd5   : > { %4063 = vmatmul.mubr.bf16.vlgmr.msra.gmra.mrb[0].mxu1 %v722_v21 }
 0x1a2   : > { %v934_v30 = vpop.f32.mrb[0].mxu0 }
 0x1a3   : > { %v5225_v33 = vadd.f32 %v934_v30, %v760_v27  ;;  %v936_v34 = vpop.f32.mrb[1].mxu0 }
 0x1a4   : > { %v938_v35 = vpop.f32.mrb[2].mxu0  ;;  %v937_v37 = vadd.f32 %v936_v34, %v764_v31 }
 0x1a5   : > { %v940_v36 = vpop.f32.mrb[3].mxu0  ;;  %4070 = vmatprep.mubr.msk.f32.mxu0 %vm984_vm1, %v5225_v33  ;;  %v5251_v45 = vadd.f32 %v938_v35, %v760_v27 }
 0x1a6   : > { %v941_v38 = vadd.f32 %v940_v36, %v764_v31 }
 0x1a8   : > { %v5238_v41 = vpack.i.bf16 %v941_v38, %v937_v37  ;;  %v4198_v42 = vpack.c.bf16 %v941_v38, %v937_v37  ;;  %v977_v58 = vpop.f32.mrb[0].mxu1 }
 0x1a9   : > { %v4064_v60 = vpop.f32.mrb[1].mxu1  ;;  %v5284_v62 = vadd.f32 %v977_v58, %v768_v59 }
 0x1aa   : > { %4367 = vrot.lane.b32.xlu1 %v5238_v41, %s4832_s21  ;;  %4200 = vmatprep.subr.msk.bf16.mxu0 %vm5232_vm2, %v4198_v42  ;;  %v980_v61 = vpop.f32.mrb[2].mxu1 }
 0x1ab   : > { %4203 = vmatpush3.bf16.xpose.msk.msra.mxu0 %vm5232_vm2, %v4198_v42  ;;  %v5286_v63 = vadd.f32 %v980_v61, %v768_v59  ;;  %v4065_v0 = vpop.f32.mrb[3].mxu1 }
 0x1ad   : > { %v4204_v1 = vpack.c.bf16 %v5286_v63, %v5284_v62 }
 0x1ae   : > { %1181 = vrot.lane.b32.xlu1 %v5225_v33, %s4833_s1 }
 0x1af   : > { %4205 = vmatprep.subr.bf16.mxu0 %v4204_v1 }
 0x1b2   : > { %4071 = vmatmul.mubr.msk.f32.vlgmr.msra.gmra.mrb[4].mxu0 %vm984_vm1, %v5251_v45 }
 0x1b3   : > { %4207 = vmatpush3.bf16.msra.mxu0 %v4204_v1 }
 0x21c   : > { %v4368_v17 = vpop.permute.xlu1 %4367 }
 0x21d   : > { %v4370_v25 = vunpack.i.h.bf16 %v4368_v17  ;;  %v4369_v27 = vunpack.i.l.bf16 %v4368_v17 }
 0x21f   : > { %v4218_v31 = vpack.c.bf16 %v4370_v25, %v4369_v27 }
 0x220   : > { %v1182_v18 = vpop.permute.xlu1 %1181 }
 0x285   : > { %v4072_v51 = vpop.f32.mrb[4].mxu0 }
 0x286   : > { %v1063_v52 = vpop.f32.mrb[5].mxu0  ;;  %v1075_v55 = vsel %vm1073_vm4, -1e+09, %v4072_v51 }
 0x287   : > { %v1074_v53 = vsel %vm1072_vm3, -1e+09, %v1063_v52  ;;  %v1079_v56 = vsel %vm984_vm1, %v1075_v55, -inf }
 0x288   : > { %v1076_v54 = vsel %vm984_vm1, %v1074_v53, -inf }
 0x289   : > { %1077 = vmax.xlane.f32.xlu0 %v1076_v54 }
 0x28d   : > { %1080 = vmax.xlane.f32.xlu0 %v1079_v56 }
 0x2a3   : > { %4362 = vrot.lane.b32.xlu0 %v5238_v41, %s4833_s1 }
 0x2a7   : > { %1396 = vrot.lane.b32.xlu0 %v5225_v33, %s4832_s21 }
 0x316   : > { %v1078_v2 = vpop.xlane.xlu0 %1077 }
 0x317   : > { %v1082_v3 = vsub.f32 %v1074_v53, %v1078_v2  ;;  %v5335_v2 = vpack.i.bf16 %v5286_v63, %v5284_v62 }
 0x319   : > { %v1084_v7 = vmul.f32 1.442695, %v1082_v3 }
 0x31a   : > { %v1081_v5 = vpop.xlane.xlu0 %1080 }
 0x31b   : > { %v1083_v6 = vsub.f32 %v1075_v55, %v1081_v5 }
 0x31d   : > { %v1086_v8 = vmul.f32 1.442695, %v1083_v6 }
 0x31e   : > { %v4363_v9 = vpop.permute.xlu0 %4362 }
 0x31f   : > { %4551 = vpow2.f32 %v1086_v8  ;;  %v4365_v10 = vunpack.i.h.bf16 %v4363_v9  ;;  %v4364_v11 = vunpack.i.l.bf16 %v4363_v9 }
 0x320   : > { %4553 = vpow2.f32 %v1084_v7 }
 0x321   : > { %v4208_v12 = vpack.c.bf16 %v4365_v10, %v4364_v11 }
 0x322   : > { %v1397_v34 = vpop.permute.xlu0 %1396 }
 0x323   : > { %4210 = vmatprep.subr.msk.bf16.mxu0 %vm5232_vm2, %v4208_v12 }
 0x329   : > { %v4552_v13 = vpop.eup %4551 }
 0x32a   : > { %v1091_v14 = vsel %vm984_vm1, %v4552_v13, 0.0  ;;  %v4554_v15 = vpop.eup %4553 }
 0x32b   : > { %1092 = vadd.xlane.f32.xlu1 %v1091_v14  ;;  %v1088_v16 = vsel %vm984_vm1, %v4554_v15, 0.0 }
 0x32f   : > { %1089 = vadd.xlane.f32.xlu1 %v1088_v16 }
 0x340   : > { %1183 = vrot.lane.b32.xlu1 %v5251_v45, %s4833_s1 }
 0x344   : > { %1398 = vrot.lane.b32.xlu1 %v5251_v45, %s4832_s21 }
 0x3b8   : > { %v1093_v19 = vpop.xlane.xlu1 %1092 }
 0x3b9   : > { %4555 = vrcp.f32 %v1093_v19 }
 0x3bc   : > { %v1090_v20 = vpop.xlane.xlu1 %1089 }
 0x3bd   : > { %4557 = vrcp.f32 %v1090_v20 }
 0x3c0   : > { %v1184_v32 = vpop.permute.xlu1 %1183 }
 0x3c3   : > { %v4556_v21 = vpop.eup %4555 }
 0x3c4   : > { %v1097_v30 = vmul.f32 %v4556_v21, %v4552_v13  ;;  %v1399_v35 = vpop.permute.xlu1 %1398 }
 0x3c7   : > { %v4558_v22 = vpop.eup %4557 }
 0x3c8   : > { %v1096_v28 = vmul.f32 %v4558_v22, %v4554_v15 }
 0x3ca   : > { %4077 = vmatprep.mubr.msk.f32.mxu0 %vm984_vm1, %v1096_v28 }
 0x3cb   : > { %4078 = vmatmul.mubr.msk.f32.vlgmr.msra.gmra.mrb[6].mxu0 %vm984_vm1, %v1097_v30 }
 0x3cc   : > { %4213 = vmatpush3.bf16.xpose.msk.msra.mxu0 %vm5232_vm2, %v4208_v12  ;;  %4084 = vmatprep.mubr.msk.f32.mxu0 %vm984_vm1, %v1182_v18 }
 0x3cd   : > { %4220 = vmatprep.subr.msk.bf16.mxu0 %vm5232_vm2, %v4218_v31 }
 0x3d3   : > { %4085 = vmatmul.mubr.msk.f32.vlgmr.msra.gmra.mrb[8].mxu0 %vm984_vm1, %v1184_v32 }
 0x3d4   : > { %4223 = vmatpush3.bf16.xpose.msk.msra.mxu0 %vm5232_vm2, %v4218_v31  ;;  %4098 = vmatprep.mubr.msk.f32.mxu0 %vm984_vm1, %v1397_v34 }
 0x3db   : > { %4099 = vmatmul.mubr.msk.f32.vlgmr.msra.gmra.mrb[10].mxu0 %vm984_vm1, %v1399_v35 }
 0x49e   : > { %v4079_v36 = vpop.f32.mrb[6].mxu0 }
 0x49f   : > { %1180 = vst.msk [vmem:[#allocation3 + $0x8] sm:$0xff] %vm984_vm1, %v4079_v36  ;;  %v1170_v37 = vpop.f32.mrb[7].mxu0 }
 0x4a0   : > { %1179 = vst.msk [vmem:[#allocation3] sm:$0xff] %vm984_vm1, %v1170_v37 }
 0x4a6   : > { %v4086_v38 = vpop.f32.mrb[8].mxu0 }
 0x4a7   : > { %v1263_v40 = vpop.f32.mrb[9].mxu0  ;;  %v1273_v51 = vsel %vm1073_vm4, -1e+09, %v4086_v38 }
 0x4a8   : > { %v1277_v52 = vsel %vm984_vm1, %v1273_v51, -inf  ;;  %v1272_v10 = vsel %vm1072_vm3, -1e+09, %v1263_v40 }
 0x4a9   : > { %v1274_v11 = vsel %vm984_vm1, %v1272_v10, -inf }
 0x4ae   : > { %v4100_v42 = vpop.f32.mrb[10].mxu0 }
 0x4af   : > { %v1488_v43 = vsel %vm1073_vm4, -1e+09, %v4100_v42  ;;  %v1478_v44 = vpop.f32.mrb[11].mxu0 }
 0x4b0   : > { %v1487_v46 = vsel %vm1072_vm3, -1e+09, %v1478_v44  ;;  %v1492_v47 = vsel %vm984_vm1, %v1488_v43, -inf }
 0x4b1   : > { %1493 = vmax.xlane.f32.xlu1 %v1492_v47  ;;  %v1489_v48 = vsel %vm984_vm1, %v1487_v46, -inf }
 0x4b2   : > { %1490 = vmax.xlane.f32.xlu0 %v1489_v48 }
 0x4c2   : > { %4377 = vrot.lane.b32.xlu1 %v5238_v41, %s4834_s15 }
 0x4c6   : > { %1609 = vrot.lane.b32.xlu1 %v5225_v33, %s4834_s15 }
 0x4ca   : > { %1611 = vrot.lane.b32.xlu1 %v5251_v45, %s4834_s15 }
 0x4ee   : > { %1278 = vmax.xlane.f32.xlu1 %v1277_v52 }
 0x53e   : > { %v1494_v53 = vpop.xlane.xlu1 %1493 }
 0x53f   : > { %v1496_v54 = vsub.f32 %v1488_v43, %v1494_v53  ;;  %v1491_v55 = vpop.xlane.xlu0 %1490 }
 0x540   : > { %v1495_v56 = vsub.f32 %v1487_v46, %v1491_v55 }
 0x541   : > { %v1499_v58 = vmul.f32 1.442695, %v1496_v54 }
 0x542   : > { %v1497_v59 = vmul.f32 1.442695, %v1495_v56  ;;  %v4378_v3 = vpop.permute.xlu1 %4377 }
 0x543   : > { %4559 = vpow2.f32 %v1499_v58  ;;  %v4380_v15 = vunpack.i.h.bf16 %v4378_v3  ;;  %v4379_v16 = vunpack.i.l.bf16 %v4378_v3 }
 0x544   : > { %4561 = vpow2.f32 %v1497_v59 }
 0x545   : > { %v4228_v20 = vpack.c.bf16 %v4380_v15, %v4379_v16 }
 0x546   : > { %v1610_v5 = vpop.permute.xlu1 %1609 }
 0x54a   : > { %v1612_v6 = vpop.permute.xlu1 %1611 }
 0x54d   : > { %v4560_v60 = vpop.eup %4559 }
 0x54e   : > { %v1504_v61 = vsel %vm984_vm1, %v4560_v60, 0.0  ;;  %v4562_v0 = vpop.eup %4561 }
 0x54f   : > { %1505 = vadd.xlane.f32.xlu0 %v1504_v61  ;;  %v1501_v1 = vsel %vm984_vm1, %v4562_v0, 0.0 }
 0x553   : > { %1502 = vadd.xlane.f32.xlu0 %v1501_v1 }
 0x569   : > { %4372 = vrot.lane.b32.xlu0 %v5335_v2, %s4832_s21 }
 0x57b   : > { %v1279_v7 = vpop.xlane.xlu1 %1278 }
 0x57c   : > { %v1281_v8 = vsub.f32 %v1273_v51, %v1279_v7 }
 0x57e   : > { %v1284_v9 = vmul.f32 1.442695, %v1281_v8 }
 0x580   : > { %4563 = vpow2.f32 %v1284_v9 }
 0x588   : > { %1275 = vmax.xlane.f32.xlu0 %v1274_v11 }
 0x58a   : > { %v5342_v12 = vpop.eup %4563 }
 0x58b   : > { %v1289_v62 = vsel %vm984_vm1, %v5342_v12, 0.0 }
 0x58c   : > { %1290 = vadd.xlane.f32.xlu1 %v1289_v62 }
 0x5dc   : > { %v1506_v63 = vpop.xlane.xlu0 %1505 }
 0x5dd   : > { %4565 = vrcp.f32 %v1506_v63 }
 0x5e0   : > { %v1503_v13 = vpop.xlane.xlu0 %1502 }
 0x5e1   : > { %4567 = vrcp.f32 %v1503_v13 }
 0x5e4   : > { %v4373_v14 = vpop.permute.xlu0 %4372 }
 0x5e5   : > { %v4375_v17 = vunpack.i.h.bf16 %v4373_v14  ;;  %v4374_v18 = vunpack.i.l.bf16 %v4373_v14 }
 0x5e7   : > { %v4224_v19 = vpack.c.bf16 %v4375_v17, %v4374_v18  ;;  %v4566_v21 = vpop.eup %4565 }
 0x5e8   : > { %v1510_v27 = vmul.f32 %v4566_v21, %v4560_v60 }
 0x5e9   : > { %4225 = vmatprep.subr.bf16.mxu0 %v4224_v19 }
 0x5ea   : > { %4227 = vmatpush3.bf16.msra.mxu0 %v4224_v19 }
 0x5eb   : > { %v4568_v22 = vpop.eup %4567  ;;  %4230 = vmatprep.subr.msk.bf16.mxu0 %vm5232_vm2, %v4228_v20 }
 0x5ec   : > { %v1509_v25 = vmul.f32 %v4568_v22, %v4562_v0 }
 0x5ee   : > { %4105 = vmatprep.mubr.msk.f32.mxu0 %vm984_vm1, %v1509_v25 }
 0x5ef   : > { %4106 = vmatmul.mubr.msk.f32.vlgmr.msra.gmra.mrb[12].mxu0 %vm984_vm1, %v1510_v27 }
 0x5f0   : > { %4112 = vmatprep.mubr.msk.f32.mxu0 %vm984_vm1, %v1610_v5 }
 0x5f3   : > { %4233 = vmatpush3.bf16.xpose.msk.msra.mxu0 %vm5232_vm2, %v4228_v20 }
 0x5fa   : > { %4113 = vmatmul.mubr.msk.f32.vlgmr.msra.gmra.mrb[14].mxu0 %vm984_vm1, %v1612_v6 }
 0x615   : > { %v1276_v28 = vpop.xlane.xlu0 %1275 }
 0x616   : > { %v1280_v31 = vsub.f32 %v1272_v10, %v1276_v28 }
 0x618   : > { %v1282_v34 = vmul.f32 1.442695, %v1280_v31 }
 0x619   : > { %v1291_v0 = vpop.xlane.xlu1 %1290 }
 0x61a   : > { %4569 = vpow2.f32 %v1282_v34 }
 0x624   : > { %v4570_v43 = vpop.eup %4569 }
 0x625   : > { %v1286_v44 = vsel %vm984_vm1, %v4570_v43, 0.0 }
 0x6c2   : > { %v5354_v30 = vpop.f32.mrb[12].mxu0 }
 0x6c3   : > { %v5356_v32 = vpop.f32.mrb[13].mxu0 }
 0x6cd   : > { %v4114_v35 = vpop.f32.mrb[14].mxu0 }
 0x6ce   : > { %v1691_v36 = vpop.f32.mrb[15].mxu0  ;;  %v1701_v40 = vsel %vm1073_vm4, -1e+09, %v4114_v35 }
 0x6cf   : > { %v1700_v37 = vsel %vm1072_vm3, -1e+09, %v1691_v36  ;;  %v1705_v42 = vsel %vm984_vm1, %v1701_v40, -inf }
 0x6d0   : > { %v1702_v38 = vsel %vm984_vm1, %v1700_v37, -inf }
 0x6d1   : > { %1703 = vmax.xlane.f32.xlu0 %v1702_v38 }
 0x6d5   : > { %1706 = vmax.xlane.f32.xlu0 %v1705_v42 }
 0x6d9   : > { %1287 = vadd.xlane.f32.xlu0 %v1286_v44 }
 0x75e   : > { %v1704_v46 = vpop.xlane.xlu0 %1703 }
 0x75f   : > { %v1708_v47 = vsub.f32 %v1700_v37, %v1704_v46 }
 0x761   : > { %v1710_v48 = vmul.f32 1.442695, %v1708_v47 }
 0x762   : > { %v1707_v51 = vpop.xlane.xlu0 %1706 }
 0x763   : > { %4571 = vpow2.f32 %v1710_v48  ;;  %v1709_v52 = vsub.f32 %v1701_v40, %v1707_v51 }
 0x765   : > { %v1712_v53 = vmul.f32 1.442695, %v1709_v52 }
 0x766   : > { %v1288_v54 = vpop.xlane.xlu0 %1287 }
 0x767   : > { %4573 = vpow2.f32 %v1712_v53 }
 0x768   : > { %4575 = vrcp.f32 %v1288_v54 }
 0x769   : > { %4577 = vrcp.f32 %v1291_v0 }
 0x76d   : > { %v4572_v55 = vpop.eup %4571 }
 0x76e   : > { %v1714_v56 = vsel %vm984_vm1, %v4572_v55, 0.0 }
 0x76f   : > { %1715 = vadd.xlane.f32.xlu0 %v1714_v56 }
 0x771   : > { %v4574_v58 = vpop.eup %4573 }
 0x772   : > { %v4576_v59 = vpop.eup %4575  ;;  %v1717_v60 = vsel %vm984_vm1, %v4574_v58, 0.0 }
 0x773   : > { %1718 = vadd.xlane.f32.xlu1 %v1717_v60  ;;  %v1294_v61 = vmul.f32 %v4576_v59, %v4570_v43  ;;  %v4578_v9 = vpop.eup %4577 }
 0x774   : > { %v1295_v13 = vmul.f32 %v4578_v9, %v5342_v12 }
 0x775   : > { %4091 = vmatprep.mubr.msk.f32.mxu1 %vm984_vm1, %v1294_v61 }
 0x784   : > { %4387 = vrot.lane.b32.xlu1 %v5335_v2, %s4834_s15 }
 0x785   : > { %4382 = vrot.lane.b32.xlu0 %v5335_v2, %s4833_s1 }
 0x788   : > { %4392 = vrot.lane.b32.xlu1 %v5238_v41, %s4835_s0 }
 0x789   : > { %1824 = vrot.lane.b32.xlu0 %v5251_v45, %s4835_s0 }
 0x78c   : > { %1822 = vrot.lane.b32.xlu1 %v5225_v33, %s4835_s0 }
 0x7fc   : > { %v1716_v1 = vpop.xlane.xlu0 %1715 }
 0x7fd   : > { %4579 = vrcp.f32 %v1716_v1 }
 0x800   : > { %v1719_v3 = vpop.xlane.xlu1 %1718  ;;  %v4383_v5 = vpop.permute.xlu0 %4382 }
 0x801   : > { %4581 = vrcp.f32 %v1719_v3  ;;  %v4385_v6 = vunpack.i.h.bf16 %v4383_v5  ;;  %v4384_v7 = vunpack.i.l.bf16 %v4383_v5 }
 0x803   : > { %v4214_v8 = vpack.c.bf16 %v4385_v6, %v4384_v7 }
 0x804   : > { %v4388_v10 = vpop.permute.xlu1 %4387  ;;  %v1825_v12 = vpop.permute.xlu0 %1824 }
 0x805   : > { %v4390_v11 = vunpack.i.h.bf16 %v4388_v10  ;;  %v4389_v62 = vunpack.i.l.bf16 %v4388_v10  ;;  %4215 = vmatprep.subr.bf16.mxu1 %v4214_v8 }
 0x806   : > { %4217 = vmatpush3.bf16.msra.mxu1 %v4214_v8 }
 0x807   : > { %v4580_v63 = vpop.eup %4579  ;;  %v4234_v14 = vpack.c.bf16 %v4390_v11, %v4389_v62 }
 0x808   : > { %v4393_v15 = vpop.permute.xlu1 %4392  ;;  %v1722_v16 = vmul.f32 %v4580_v63, %v4572_v55 }
 0x809   : > { %v4395_v17 = vunpack.i.h.bf16 %v4393_v15  ;;  %v4394_v18 = vunpack.i.l.bf16 %v4393_v15  ;;  %4092 = vmatmul.mubr.msk.f32.vlgmr.msra.gmra.mrb[4].mxu1 %vm984_vm1, %v1295_v13  ;;  %4235 = vmatprep.subr.bf16.mxu1 %v4234_v14 }
 0x80a   : > { %4237 = vmatpush3.bf16.msra.mxu1 %v4234_v14  ;;  %4119 = vmatprep.mubr.msk.f32.mxu1 %vm984_vm1, %v1722_v16 }
 0x80b   : > { %v4582_v19 = vpop.eup %4581  ;;  %v4238_v20 = vpack.c.bf16 %v4395_v17, %v4394_v18 }
 0x80c   : > { %v1723_v21 = vmul.f32 %v4582_v19, %v4574_v58  ;;  %v1823_v22 = vpop.permute.xlu1 %1822 }
 0x80d   : > { %4240 = vmatprep.subr.msk.bf16.mxu1 %vm5232_vm2, %v4238_v20 }
 0x80e   : > { %4120 = vmatmul.mubr.msk.f32.vlgmr.msra.gmra.mrb[6].mxu1 %vm984_vm1, %v1723_v21 }
 0x80f   : > { %4126 = vmatprep.mubr.msk.f32.mxu1 %vm984_vm1, %v1823_v22 }
 0x813   : > { %4243 = vmatpush3.bf16.xpose.msk.msra.mxu1 %vm5232_vm2, %v4238_v20 }
 0x81a   : > { %4127 = vmatmul.mubr.msk.f32.vlgmr.msra.gmra.mrb[8].mxu1 %vm984_vm1, %v1825_v12 }
 0x8dc   : > { %v5388_v25 = vpop.f32.mrb[4].mxu1 }
 0x8dd   : > { %v5390_v27 = vpop.f32.mrb[5].mxu1 }
 0x8e1   : > { %v5392_v28 = vpop.f32.mrb[6].mxu1 }
 0x8e2   : > { %v5394_v31 = vpop.f32.mrb[7].mxu1 }
 0x8ed   : > { %v4128_v34 = vpop.f32.mrb[8].mxu1 }
 0x8ee   : > { %v1914_v35 = vsel %vm1073_vm4, -1e+09, %v4128_v34  ;;  %v1904_v36 = vpop.f32.mrb[9].mxu1 }
 0x8ef   : > { %v1913_v37 = vsel %vm1072_vm3, -1e+09, %v1904_v36  ;;  %v1918_v38 = vsel %vm984_vm1, %v1914_v35, -inf }
 0x8f0   : > { %1919 = vmax.xlane.f32.xlu0 %v1918_v38  ;;  %v1915_v40 = vsel %vm984_vm1, %v1913_v37, -inf }
 0x8f1   : > { %1916 = vmax.xlane.f32.xlu1 %v1915_v40 }
 0x902   : > { %4397 = vrot.lane.b32.xlu1 %v5335_v2, %s4835_s0 }
 0x906   : > { %2035 = vrot.lane.b32.xlu1 %v5225_v33, %s4836_s26 }
 0x90a   : > { %2037 = vrot.lane.b32.xlu1 %v5251_v45, %s4836_s26 }
 0x97d   : > { %v1920_v42 = vpop.xlane.xlu0 %1919 }
 0x97e   : > { %v1922_v43 = vsub.f32 %v1914_v35, %v1920_v42  ;;  %v1917_v44 = vpop.xlane.xlu1 %1916 }
 0x97f   : > { %v1921_v46 = vsub.f32 %v1913_v37, %v1917_v44 }
 0x980   : > { %v1925_v47 = vmul.f32 1.442695, %v1922_v43 }
 0x981   : > { %v1923_v48 = vmul.f32 1.442695, %v1921_v46 }
 0x982   : > { %4583 = vpow2.f32 %v1925_v47  ;;  %v4398_v51 = vpop.permute.xlu1 %4397 }
 0x983   : > { %v4400_v52 = vunpack.i.h.bf16 %v4398_v51  ;;  %v4399_v53 = vunpack.i.l.bf16 %v4398_v51  ;;  %4585 = vpow2.f32 %v1923_v48 }
 0x985   : > { %v4244_v54 = vpack.c.bf16 %v4400_v52, %v4399_v53 }
 0x986   : > { %v2036_v10 = vpop.permute.xlu1 %2035 }
 0x987   : > { %4245 = vmatprep.subr.bf16.mxu0 %v4244_v54 }
 0x988   : > { %4247 = vmatpush3.bf16.msra.mxu0 %v4244_v54 }
 0x98a   : > { %v2038_v11 = vpop.permute.xlu1 %2037 }
 0x98c   : > { %v4584_v55 = vpop.eup %4583 }
 0x98d   : > { %v1930_v56 = vsel %vm984_vm1, %v4584_v55, 0.0  ;;  %v4586_v58 = vpop.eup %4585 }
 0x98e   : > { %1931 = vadd.xlane.f32.xlu0 %v1930_v56  ;;  %v1927_v59 = vsel %vm984_vm1, %v4586_v58, 0.0 }
 0x992   : > { %1928 = vadd.xlane.f32.xlu0 %v1927_v59 }
 0x9a8   : > { %4402 = vrot.lane.b32.xlu0 %v5238_v41, %s4836_s26 }
 0xa1b   : > { %v1932_v60 = vpop.xlane.xlu0 %1931 }
 0xa1c   : > { %4587 = vrcp.f32 %v1932_v60 }
 0xa1f   : > { %v1929_v61 = vpop.xlane.xlu0 %1928 }
 0xa20   : > { %4589 = vrcp.f32 %v1929_v61 }
 0xa23   : > { %v4403_v0 = vpop.permute.xlu0 %4402 }
 0xa24   : > { %v4405_v1 = vunpack.i.h.bf16 %v4403_v0  ;;  %v4404_v3 = vunpack.i.l.bf16 %v4403_v0 }
 0xa26   : > { %v4248_v5 = vpack.c.bf16 %v4405_v1, %v4404_v3  ;;  %v4588_v6 = vpop.eup %4587 }
 0xa27   : > { %v1936_v9 = vmul.f32 %v4588_v6, %v4584_v55 }
 0xa28   : > { %4250 = vmatprep.subr.msk.bf16.mxu0 %vm5232_vm2, %v4248_v5 }
 0xa2a   : > { %v4590_v7 = vpop.eup %4589 }
 0xa2b   : > { %v1935_v8 = vmul.f32 %v4590_v7, %v4586_v58 }
 0xa2d   : > { %4133 = vmatprep.mubr.msk.f32.mxu0 %vm984_vm1, %v1935_v8 }
 0xa2e   : > { %4134 = vmatmul.mubr.msk.f32.vlgmr.msra.gmra.mrb[16].mxu0 %vm984_vm1, %v1936_v9 }
 0xa2f   : > { %4253 = vmatpush3.bf16.xpose.msk.msra.mxu0 %vm5232_vm2, %v4248_v5  ;;  %4140 = vmatprep.mubr.msk.f32.mxu0 %vm984_vm1, %v2036_v10 }
 0xa36   : > { %4141 = vmatmul.mubr.msk.f32.vlgmr.msra.gmra.mrb[18].mxu0 %vm984_vm1, %v2038_v11 }
 0xb01   : > { %v5420_v62 = vpop.f32.mrb[16].mxu0 }
 0xb02   : > { %v5422_v63 = vpop.f32.mrb[17].mxu0 }
 0xb09   : > { %v4142_v13 = vpop.f32.mrb[18].mxu0 }
 0xb0a   : > { %v2127_v14 = vsel %vm1073_vm4, -1e+09, %v4142_v13  ;;  %v2117_v15 = vpop.f32.mrb[19].mxu0 }
 0xb0b   : > { %v2126_v16 = vsel %vm1072_vm3, -1e+09, %v2117_v15  ;;  %v2131_v17 = vsel %vm984_vm1, %v2127_v14, -inf }
 0xb0c   : > { %2132 = vmax.xlane.f32.xlu0 %v2131_v17  ;;  %v2128_v18 = vsel %vm984_vm1, %v2126_v16, -inf }
 0xb0d   : > { %2129 = vmax.xlane.f32.xlu1 %v2128_v18 }
 0xb1e   : > { %4407 = vrot.lane.b32.xlu1 %v5335_v2, %s4836_s26 }
 0xb22   : > { %2248 = vrot.lane.b32.xlu1 %v5225_v33, %s4837_s24 }
 0xb26   : > { %2250 = vrot.lane.b32.xlu1 %v5251_v45, %s4837_s24 }
 0xb99   : > { %v2133_v19 = vpop.xlane.xlu0 %2132 }
 0xb9a   : > { %v2135_v20 = vsub.f32 %v2127_v14, %v2133_v19  ;;  %v2130_v21 = vpop.xlane.xlu1 %2129 }
 0xb9b   : > { %v2134_v22 = vsub.f32 %v2126_v16, %v2130_v21 }
 0xb9c   : > { %v2138_v12 = vmul.f32 1.442695, %v2135_v20 }
 0xb9d   : > { %v2136_v34 = vmul.f32 1.442695, %v2134_v22 }
 0xb9e   : > { %4591 = vpow2.f32 %v2138_v12  ;;  %v4408_v35 = vpop.permute.xlu1 %4407 }
 0xb9f   : > { %v4410_v36 = vunpack.i.h.bf16 %v4408_v35  ;;  %v4409_v37 = vunpack.i.l.bf16 %v4408_v35  ;;  %4593 = vpow2.f32 %v2136_v34 }
 0xba1   : > { %v4254_v38 = vpack.c.bf16 %v4410_v36, %v4409_v37 }
 0xba2   : > { %v2249_v59 = vpop.permute.xlu1 %2248 }
 0xba3   : > { %4255 = vmatprep.subr.bf16.mxu1 %v4254_v38 }
 0xba4   : > { %4257 = vmatpush3.bf16.msra.mxu1 %v4254_v38 }
 0xba6   : > { %v2251_v60 = vpop.permute.xlu1 %2250 }
 0xba8   : > { %v4592_v40 = vpop.eup %4591 }
 0xba9   : > { %v2143_v42 = vsel %vm984_vm1, %v4592_v40, 0.0  ;;  %v4594_v43 = vpop.eup %4593 }
 0xbaa   : > { %2144 = vadd.xlane.f32.xlu0 %v2143_v42  ;;  %v2140_v44 = vsel %vm984_vm1, %v4594_v43, 0.0 }
 0xbae   : > { %2141 = vadd.xlane.f32.xlu0 %v2140_v44 }
 0xbc4   : > { %4412 = vrot.lane.b32.xlu0 %v5238_v41, %s4837_s24 }
 0xc37   : > { %v2145_v46 = vpop.xlane.xlu0 %2144 }
 0xc38   : > { %4595 = vrcp.f32 %v2145_v46 }
 0xc3b   : > { %v2142_v47 = vpop.xlane.xlu0 %2141 }
 0xc3c   : > { %4597 = vrcp.f32 %v2142_v47 }
 0xc3f   : > { %v4413_v48 = vpop.permute.xlu0 %4412 }
 0xc40   : > { %v4415_v51 = vunpack.i.h.bf16 %v4413_v48  ;;  %v4414_v52 = vunpack.i.l.bf16 %v4413_v48 }
 0xc42   : > { %v4258_v53 = vpack.c.bf16 %v4415_v51, %v4414_v52  ;;  %v4596_v54 = vpop.eup %4595 }
 0xc43   : > { %v2149_v58 = vmul.f32 %v4596_v54, %v4592_v40 }
 0xc44   : > { %4260 = vmatprep.subr.msk.bf16.mxu1 %vm5232_vm2, %v4258_v53 }
 0xc46   : > { %v4598_v55 = vpop.eup %4597 }
 0xc47   : > { %v2148_v56 = vmul.f32 %v4598_v55, %v4594_v43 }
 0xc49   : > { %4147 = vmatprep.mubr.msk.f32.mxu1 %vm984_vm1, %v2148_v56 }
 0xc4a   : > { %4148 = vmatmul.mubr.msk.f32.vlgmr.msra.gmra.mrb[10].mxu1 %vm984_vm1, %v2149_v58 }
 0xc4b   : > { %4263 = vmatpush3.bf16.xpose.msk.msra.mxu1 %vm5232_vm2, %v4258_v53  ;;  %4154 = vmatprep.mubr.msk.f32.mxu1 %vm984_vm1, %v2249_v59 }
 0xc52   : > { %4155 = vmatmul.mubr.msk.f32.vlgmr.msra.gmra.mrb[12].mxu1 %vm984_vm1, %v2251_v60 }
 0xd1d   : > { %v5448_v61 = vpop.f32.mrb[10].mxu1 }
 0xd1e   : > { %v5450_v0 = vpop.f32.mrb[11].mxu1 }
 0xd25   : > { %v4156_v1 = vpop.f32.mrb[12].mxu1 }
 0xd26   : > { %v2340_v3 = vsel %vm1073_vm4, -1e+09, %v4156_v1  ;;  %v2330_v5 = vpop.f32.mrb[13].mxu1 }
 0xd27   : > { %v2339_v6 = vsel %vm1072_vm3, -1e+09, %v2330_v5  ;;  %v2344_v7 = vsel %vm984_vm1, %v2340_v3, -inf }
 0xd28   : > { %2345 = vmax.xlane.f32.xlu0 %v2344_v7  ;;  %v2341_v8 = vsel %vm984_vm1, %v2339_v6, -inf }
 0xd29   : > { %2342 = vmax.xlane.f32.xlu1 %v2341_v8 }
 0xd3a   : > { %4417 = vrot.lane.b32.xlu1 %v5335_v2, %s4837_s24 }
 0xd3e   : > { %2461 = vrot.lane.b32.xlu1 %v5225_v33, %s4838_s25 }
 0xd42   : > { %2463 = vrot.lane.b32.xlu1 %v5251_v45, %s4838_s25 }
 0xdb5   : > { %v2346_v9 = vpop.xlane.xlu0 %2345 }
 0xdb6   : > { %v2348_v10 = vsub.f32 %v2340_v3, %v2346_v9  ;;  %v2343_v11 = vpop.xlane.xlu1 %2342 }
 0xdb7   : > { %v2347_v13 = vsub.f32 %v2339_v6, %v2343_v11 }
 0xdb8   : > { %v2351_v14 = vmul.f32 1.442695, %v2348_v10 }
 0xdb9   : > { %v2349_v15 = vmul.f32 1.442695, %v2347_v13 }
 0xdba   : > { %4599 = vpow2.f32 %v2351_v14  ;;  %v4418_v16 = vpop.permute.xlu1 %4417 }
 0xdbb   : > { %v4420_v17 = vunpack.i.h.bf16 %v4418_v16  ;;  %v4419_v18 = vunpack.i.l.bf16 %v4418_v16  ;;  %4601 = vpow2.f32 %v2349_v15 }
 0xdbd   : > { %v4264_v19 = vpack.c.bf16 %v4420_v17, %v4419_v18  ;;  %v4463_v18 = vld [vmem:[%s5129_s18] sm:$0xff]  }
 0xdbe   : > { %v2462_v44 = vpop.permute.xlu1 %2461 }
 0xdbf   : > { %4265 = vmatprep.subr.bf16.mxu0 %v4264_v19 }
 0xdc0   : > { %4267 = vmatpush3.bf16.msra.mxu0 %v4264_v19  ;;  %v4464_v19 = vld [vmem:[%s5129_s18 + $0x8] sm:$0xff]  }
 0xdc4   : > { %v4600_v20 = vpop.eup %4599 }
 0xdc5   : > { %v2356_v33 = vsel %vm984_vm1, %v4600_v20, 0.0  ;;  %v4602_v21 = vpop.eup %4601 }
 0xdc6   : > { %2357 = vadd.xlane.f32.xlu0 %v2356_v33  ;;  %v2353_v45 = vsel %vm984_vm1, %v4602_v21, 0.0  ;;  %v4466_v33 = vld [vmem:[%s5129_s18 + $0x18] sm:$0xff]  }
 0xdca   : > { %2354 = vadd.xlane.f32.xlu0 %v2353_v45  ;;  %v4468_v45 = vld [vmem:[%s5129_s18 + $0x28] sm:$0xff]  }
 0xde0   : > { %4422 = vrot.lane.b32.xlu0 %v5238_v41, %s4838_s25  ;;  %v2464_v41 = vpop.permute.xlu1 %2463 }
 0xe53   : > { %v2358_v22 = vpop.xlane.xlu0 %2357 }
 0xe54   : > { %4603 = vrcp.f32 %v2358_v22  ;;  %v4469_v22 = vld [vmem:[%s5129_s18 + $0x30] sm:$0xff]  }
 0xe57   : > { %v2355_v12 = vpop.xlane.xlu0 %2354 }
 0xe58   : > { %4605 = vrcp.f32 %v2355_v12  ;;  %v4470_v12 = vld [vmem:[%s5129_s18 + $0x38] sm:$0xff]  }
 0xe5b   : > { %v4423_v34 = vpop.permute.xlu0 %4422 }
 0xe5c   : > { %v4425_v35 = vunpack.i.h.bf16 %v4423_v34  ;;  %v4424_v36 = vunpack.i.l.bf16 %v4423_v34 }
 0xe5e   : > { %v4268_v37 = vpack.c.bf16 %v4425_v35, %v4424_v36  ;;  %v4604_v38 = vpop.eup %4603 }
 0xe5f   : > { %v2362_v43 = vmul.f32 %v4604_v38, %v4600_v20  ;;  %v4465_v20 = vld [vmem:[%s5129_s18 + $0x10] sm:$0xff]  }
 0xe60   : > { %4270 = vmatprep.subr.msk.bf16.mxu0 %vm5232_vm2, %v4268_v37 }
 0xe62   : > { %v4606_v40 = vpop.eup %4605 }
 0xe63   : > { %v2361_v42 = vmul.f32 %v4606_v40, %v4602_v21  ;;  %v4467_v21 = vld [vmem:[%s5129_s18 + $0x20] sm:$0xff]  }
 0xe65   : > { %4161 = vmatprep.mubr.msk.f32.mxu0 %vm984_vm1, %v2361_v42 }
 0xe66   : > { %4162 = vmatmul.mubr.msk.f32.vlgmr.msra.gmra.mrb[20].mxu0 %vm984_vm1, %v2362_v43 }
 0xe67   : > { %4273 = vmatpush3.bf16.xpose.msk.msra.mxu0 %vm5232_vm2, %v4268_v37  ;;  %4168 = vmatprep.mubr.msk.f32.mxu0 %vm984_vm1, %v2462_v44 }
 0xe6e   : > { %4169 = vmatmul.mubr.msk.f32.vlgmr.msra.gmra.mrb[22].mxu0 %vm984_vm1, %v2464_v41 }
 0xe6f   : > { %3079 = vmatprep.mubr.bf16.mxu0 %v4829_v4 }
 0xf39   : > { %v4163_v46 = vpop.f32.mrb[20].mxu0 }
 0xf3a   : > { %v2441_v47 = vpop.f32.mrb[21].mxu0 }
 0xf41   : > { %v4170_v48 = vpop.f32.mrb[22].mxu0 }
 0xf42   : > { %v2553_v51 = vsel %vm1073_vm4, -1e+09, %v4170_v48  ;;  %v2543_v52 = vpop.f32.mrb[23].mxu0 }
 0xf43   : > { %v2552_v53 = vsel %vm1072_vm3, -1e+09, %v2543_v52  ;;  %v2557_v39 = vsel %vm984_vm1, %v2553_v51, -inf }
 0xf44   : > { %2558 = vmax.xlane.f32.xlu0 %v2557_v39  ;;  %v2554_v54 = vsel %vm984_vm1, %v2552_v53, -inf  ;;  %v4471_v39 = vld [vmem:[%s5135_s20] ss:$16 sps:$4 sm:$0xff]  }
 0xf45   : > { %2555 = vmax.xlane.f32.xlu1 %v2554_v54  ;;  %v4473_v54 = vld [vmem:[%s5135_s20 + $0x4] ss:$16 sps:$4 sm:$0xff]  }
 0xf46   : > { %3047 = vmatprep.subr.bf16.mxu0 %v4473_v54  ;;  %v4523_v54 = vld [vmem:[%s5137_s19 + $0x48] sm:$0xff]  }
 0xf47   : > { %3048 = vmatpush1.bf16.msra.mxu0 %v4471_v39 }
 0xf56   : > { %4427 = vrot.lane.b32.xlu1 %v5335_v2, %s4838_s25 }
 0xf5a   : > { %1389 = vrot.lane.b32.xlu1 %v5388_v25, %s4838_s25 }
 0xf5e   : > { %1600 = vrot.lane.b32.xlu1 %v5356_v32, %s4837_s24 }
 0xf62   : > { %1602 = vrot.lane.b32.xlu1 %v5354_v30, %s4837_s24 }
 0xf66   : > { %1815 = vrot.lane.b32.xlu1 %v5392_v28, %s4836_s26 }
 0xf6a   : > { %2028 = vrot.lane.b32.xlu1 %v5420_v62, %s4835_s0 }
 0xf6e   : > { %2241 = vrot.lane.b32.xlu1 %v5448_v61, %s4834_s15 }
 0xf72   : > { %2454 = vrot.lane.b32.xlu1 %v4163_v46, %s4832_s21 }
 0xfd1   : > { %v2559_v49 = vpop.xlane.xlu0 %2558 }
 0xfd2   : > { %v2561_v50 = vsub.f32 %v2553_v51, %v2559_v49  ;;  %v2556_v2 = vpop.xlane.xlu1 %2555  ;;  %v4623_v51 = vld [vmem:[#allocation2] sm:$0xff]  ;;  %v4474_v49 = vld [vmem:[%s5135_s20 + $0x8] ss:$16 sps:$4 sm:$0xff]  }
 0xfd3   : > { %v2560_v25 = vsub.f32 %v2552_v53, %v2556_v2  ;;  %v4479_v2 = vld [vmem:[%s5135_s20 + $0x24] ss:$16 sps:$4 sm:$0xff]  }
 0xfd4   : > { %v2564_v55 = vmul.f32 1.442695, %v2561_v50  ;;  %v4476_v50 = vld [vmem:[%s5135_s20 + $0xc] ss:$16 sps:$4 sm:$0xff]   ;;  %3049 = vmatprep.subr.bf16.mxu0 %v4479_v2 }
 0xfd5   : > { %v2562_v32 = vmul.f32 1.442695, %v2560_v25  ;;  %v4482_v25 = vld [vmem:[%s5135_s20 + $0x2c] ss:$16 sps:$4 sm:$0xff]  }
 0xfd6   : > { %v4428_v56 = vpop.permute.xlu1 %4427  ;;  %v4526_v2 = vld [vmem:[%s5137_s19 + $0x88] sm:$0xff]  }
 0xfd7   : > { %4607 = vpow2.f32 %v2562_v32  ;;  %v4430_v30 = vunpack.i.h.bf16 %v4428_v56  ;;  %v4429_v58 = vunpack.i.l.bf16 %v4428_v56  ;;  %v4480_v32 = vld [vmem:[%s5135_s20 + $0x28] ss:$16 sps:$4 sm:$0xff]  }
 0xfd8   : > { %4609 = vpow2.f32 %v2564_v55  ;;  %v4477_v55 = vld [vmem:[%s5135_s20 + $0x20] ss:$16 sps:$4 sm:$0xff]  }
 0xfd9   : > { %v4274_v28 = vpack.c.bf16 %v4430_v30, %v4429_v58  ;;  %3050 = vmatpush1.bf16.msra.mxu0 %v4477_v55  ;;  %v4528_v55 = vld [vmem:[%s5137_s19 + $0xd0] sm:$0xff]  }
 0xfda   : > { %v1390_v59 = vpop.permute.xlu1 %1389 }
 0xfdb   : > { %1395 = vst.msk [vmem:[#allocation3 + $0x8] sm:$0xff] %vm1393_vm5, %v1390_v59  ;;  %4275 = vmatprep.subr.bf16.mxu1 %v4274_v28 }
 0xfdc   : > { %4277 = vmatpush3.bf16.msra.mxu1 %v4274_v28 }
 0xfdd   : > { %4178 = vmatprep.subr.bf16.mxu1 %v4830_v29 }
 0xfde   : > { %v1601_v62 = vpop.permute.xlu1 %1600 }
 0xfe1   : > { %v4608_v60 = vpop.eup %4607 }
 0xfe2   : > { %v1603_v61 = vpop.permute.xlu1 %1602  ;;  %v2566_v1 = vsel %vm984_vm1, %v4608_v60, 0.0  ;;  %v4610_v3 = vpop.eup %4609 }
 0xfe3   : > { %1608 = vst.msk [vmem:[#allocation3 + $0x8] sm:$0xff] %vm1606_vm6, %v1603_v61  ;;  %2567 = vadd.xlane.f32.xlu0 %v2566_v1  ;;  %v2569_v6 = vsel %vm984_vm1, %v4610_v3, 0.0  ;;  %v4485_v1 = vld [vmem:[%s5135_s20 + $0x44] ss:$16 sps:$4 sm:$0xff]  }
 0xfe4   : > { %3051 = vmatprep.subr.bf16.mxu0 %v4485_v1  ;;  %v4538_v1 = vld [vmem:[%s5137_s19 + $0xa0] sm:$0xff]  }
 0xfe6   : > { %v1816_v5 = vpop.permute.xlu1 %1815 }
 0xfe7   : > { %1821 = vst.msk [vmem:[#allocation3 + $0x8] sm:$0xff] %vm1819_vm7, %v1816_v5  ;;  %2570 = vadd.xlane.f32.xlu0 %v2569_v6  ;;  %v4483_v5 = vld [vmem:[%s5135_s20 + $0x40] ss:$16 sps:$4 sm:$0xff]   ;;  %v4486_v6 = vld [vmem:[%s5135_s20 + $0x48] ss:$16 sps:$4 sm:$0xff]  }
 0xfe8   : > { %3052 = vmatpush1.bf16.msra.mxu0 %v4483_v5  ;;  %v4540_v5 = vld [vmem:[%s5137_s19 + $0xe8] sm:$0xff]  }
 0xfea   : > { %v2029_v7 = vpop.permute.xlu1 %2028 }
 0xfeb   : > { %2034 = vst.msk [vmem:[#allocation3 + $0x8] sm:$0xff] %vm2032_vm8, %v2029_v7  ;;  %v4491_v7 = vld [vmem:[%s5135_s20 + $0x64] ss:$16 sps:$4 sm:$0xff]  }
 0xfec   : > { %3053 = vmatprep.subr.bf16.mxu0 %v4491_v7  ;;  %v4542_v7 = vld [vmem:[%s5137_s19 + $0xa8] sm:$0xff]  }
 0xfee   : > { %v2242_v8 = vpop.permute.xlu1 %2241 }
 0xfef   : > { %2247 = vst.msk [vmem:[#allocation3 + $0x8] sm:$0xff] %vm2245_vm9, %v2242_v8  ;;  %v4494_v8 = vld [vmem:[%s5135_s20 + $0x6c] ss:$16 sps:$4 sm:$0xff]  }
 0xff2   : > { %v2455_v9 = vpop.permute.xlu1 %2454 }
 0xff3   : > { %2460 = vst.msk [vmem:[#allocation3 + $0x8] sm:$0xff] %vm2458_vm10, %v2455_v9  ;;  %v4489_v9 = vld [vmem:[%s5135_s20 + $0x60] ss:$16 sps:$4 sm:$0xff]  }
 0xff4   : > { %3054 = vmatpush1.bf16.msra.mxu0 %v4489_v9  ;;  %v4544_v9 = vld [vmem:[%s5137_s19 + $0xf0] sm:$0xff]  }
 0xffd   : > { %1387 = vrot.lane.b32.xlu0 %v5390_v27, %s4838_s25 }
0x1001   : > { %1813 = vrot.lane.b32.xlu0 %v5394_v31, %s4836_s26 }
0x1005   : > { %2026 = vrot.lane.b32.xlu0 %v5422_v63, %s4835_s0 }
0x1009   : > { %2239 = vrot.lane.b32.xlu0 %v5450_v0, %s4834_s15 }
0x100d   : > { %2452 = vrot.lane.b32.xlu0 %v2441_v47, %s4832_s21  ;;  %s5753_s21 = scalar_lea.vmem %s5706_s5, %s5145_s28 }
0x1070   : > { %v2568_v10 = vpop.xlane.xlu0 %2567 }
0x1071   : > { %4611 = vrcp.f32 %v2568_v10  ;;  %v4492_v10 = vld [vmem:[%s5135_s20 + $0x68] ss:$16 sps:$4 sm:$0xff]  }
0x1074   : > { %v2571_v11 = vpop.xlane.xlu0 %2570 }
0x1075   : > { %4613 = vrcp.f32 %v2571_v11  ;;  %v4497_v11 = vld [vmem:[%s5135_s20 + $0x84] ss:$16 sps:$4 sm:$0xff]  }
0x1076   : > { %3055 = vmatprep.subr.bf16.mxu0 %v4497_v11  ;;  %v4546_v11 = vld [vmem:[%s5137_s19 + $0xb0] sm:$0xff]  }
0x1078   : > { %v1388_v13 = vpop.permute.xlu0 %1387 }
0x1079   : > { %1394 = vst.msk [vmem:[#allocation3] sm:$0xff] %vm1393_vm5, %v1388_v13  ;;  %v4500_v13 = vld [vmem:[%s5135_s20 + $0x8c] ss:$16 sps:$4 sm:$0xff]  }
0x107a   : > { %1607 = vst.msk [vmem:[#allocation3] sm:$0xff] %vm1606_vm6, %v1601_v62 }
0x107b   : > { %v4612_v27 = vpop.eup %4611 }
0x107c   : > { %v1814_v31 = vpop.permute.xlu0 %1813  ;;  %v2574_v14 = vmul.f32 %v4612_v27, %v4608_v60  ;;  %v4495_v27 = vld [vmem:[%s5135_s20 + $0x80] ss:$16 sps:$4 sm:$0xff]  }
0x107d   : > { %1820 = vst.msk [vmem:[#allocation3] sm:$0xff] %vm1819_vm7, %v1814_v31  ;;  %v4498_v31 = vld [vmem:[%s5135_s20 + $0x88] ss:$16 sps:$4 sm:$0xff]   ;;  %3056 = vmatpush1.bf16.msra.mxu0 %v4495_v27 }
0x107e   : > { %4175 = vmatprep.mubr.msk.f32.mxu1 %vm984_vm1, %v2574_v14  ;;  %v4503_v14 = vld [vmem:[%s5135_s20 + $0xa4] ss:$16 sps:$4 sm:$0xff]   ;;  %v4548_v27 = vld [vmem:[%s5137_s19 + $0xf8] sm:$0xff]  }
0x107f   : > { %v4614_v63 = vpop.eup %4613  ;;  %3057 = vmatprep.subr.bf16.mxu0 %v4503_v14  ;;  %v4550_v14 = vld [vmem:[%s5137_s19 + $0xb8] sm:$0xff]  }
0x1080   : > { %v2575_v0 = vmul.f32 %v4614_v63, %v4610_v3  ;;  %v2027_v15 = vpop.permute.xlu0 %2026  ;;  %v4488_v3 = vld [vmem:[%s5135_s20 + $0x4c] ss:$16 sps:$4 sm:$0xff]  }
0x1081   : > { %2033 = vst.msk [vmem:[#allocation3] sm:$0xff] %vm2032_vm8, %v2027_v15  ;;  %v4506_v63 = vld [vmem:[%s5135_s20 + $0xac] ss:$16 sps:$4 sm:$0xff]   ;;  %v4504_v15 = vld [vmem:[%s5135_s20 + $0xa8] ss:$16 sps:$4 sm:$0xff]  }
0x1082   : > { %4176 = vmatmul.mubr.msk.f32.vlgmr.msra.gmra.mrb[14].mxu1 %vm984_vm1, %v2575_v0  ;;  %v4501_v0 = vld [vmem:[%s5135_s20 + $0xa0] ss:$16 sps:$4 sm:$0xff]  }
0x1083   : > { %4194 = vmatprep.mubr.msk.bf16.mxu1 %vm4831_vm0, %v4830_v29  ;;  %4179 = vmatpush3.bf16.msra.mxu1 %v4463_v18  ;;  %v4507_v18 = vld [vmem:[%s5135_s20 + $0xc0] ss:$16 sps:$4 sm:$0xff]  }
0x1084   : > { %v2240_v16 = vpop.permute.xlu0 %2239  ;;  %4180 = vmatprep.subr.bf16.mxu1 %v4830_v29  ;;  %3058 = vmatpush1.bf16.msra.mxu0 %v4501_v0  ;;  %v2881_v0 = vsub.s32 3, %v5207_v23 }
0x1085   : > { %2246 = vst.msk [vmem:[#allocation3] sm:$0xff] %vm2245_vm9, %v2240_v16  ;;  %v4509_v16 = vld [vmem:[%s5135_s20 + $0xc4] ss:$16 sps:$4 sm:$0xff]  }
0x1086   : > { %3059 = vmatprep.subr.bf16.mxu0 %v4509_v16 }
0x1087   : > { %4181 = vmatpush3.bf16.msra.mxu1 %v4464_v19  ;;  %v4510_v19 = vld [vmem:[%s5135_s20 + $0xc8] ss:$16 sps:$4 sm:$0xff]  }
0x1088   : > { %v2453_v17 = vpop.permute.xlu0 %2452  ;;  %4182 = vmatprep.subr.bf16.mxu1 %v4830_v29  ;;  %3060 = vmatpush1.bf16.msra.mxu0 %v4507_v18 }
0x1089   : > { %2459 = vst.msk [vmem:[#allocation3] sm:$0xff] %vm2458_vm10, %v2453_v17  ;;  %v4512_v17 = vld [vmem:[%s5135_s20 + $0xcc] ss:$16 sps:$4 sm:$0xff]  }
0x108b   : > { %4183 = vmatpush3.bf16.msra.mxu1 %v4465_v20  ;;  %v4515_v20 = vld [vmem:[%s5135_s20 + $0xe4] ss:$16 sps:$4 sm:$0xff]  }
0x108c   : > { %4184 = vmatprep.subr.bf16.mxu1 %v4830_v29  ;;  %3061 = vmatprep.subr.bf16.mxu0 %v4515_v20 }
0x108f   : > { %4185 = vmatpush3.bf16.msra.mxu1 %v4466_v33  ;;  %v4513_v33 = vld [vmem:[%s5135_s20 + $0xe0] ss:$16 sps:$4 sm:$0xff]  }
0x1090   : > { %4186 = vmatprep.subr.bf16.mxu1 %v4830_v29  ;;  %3062 = vmatpush1.bf16.msra.mxu0 %v4513_v33 }
0x1093   : > { %4187 = vmatpush3.bf16.msra.mxu1 %v4467_v21  ;;  %v4516_v21 = vld [vmem:[%s5135_s20 + $0xe8] ss:$16 sps:$4 sm:$0xff]  }
0x1094   : > { %4188 = vmatprep.subr.bf16.mxu1 %v4830_v29 }
0x1097   : > { %4189 = vmatpush3.bf16.msra.mxu1 %v4468_v45  ;;  %v4518_v45 = vld [vmem:[%s5135_s20 + $0xec] ss:$16 sps:$4 sm:$0xff]  }
0x1098   : > { %4190 = vmatprep.subr.bf16.mxu1 %v4830_v29 }
0x109b   : > { %4191 = vmatpush3.bf16.msra.mxu1 %v4469_v22  ;;  %v4519_v22 = vld [vmem:[%s5137_s19 + $0x40] sm:$0xff]  }
0x109c   : > { %4192 = vmatprep.subr.bf16.mxu1 %v4830_v29  ;;  %v3834_v29 = vld [vmem:[%s5753_s21] ss:$0 sm:$0xff]  ;;  %4002 = vmatprep.subr.bf16.mxu0 %v4519_v22 }
0x109f   : > { %4193 = vmatpush3.bf16.msra.mxu1 %v4470_v12  ;;  %v4520_v12 = vld [vmem:[%s5137_s19 + $0xc0] sm:$0xff]  }
0x10a0   : > { %3090 = vmatprep.subr.bf16.mxu1 %v4476_v50  ;;  %v4525_v50 = vld [vmem:[%s5137_s19 + $0x8] sm:$0xff]  }
0x1155   : > { %v4177_v34 = vpop.f32.mrb[14].mxu1 }
0x1156   : > { %2667 = vrot.lane.b32.xlu1 %v4177_v34, %s4833_s1  ;;  %v2654_v35 = vpop.f32.mrb[15].mxu1 }
0x1157   : > { %2665 = vrot.lane.b32.xlu0 %v2654_v35, %s4833_s1 }
0x11c8   : > { %v2668_v36 = vpop.permute.xlu1 %2667 }
0x11c9   : > { %2673 = vst.msk [vmem:[#allocation3 + $0x8] sm:$0xff] %vm2671_vm11, %v2668_v36  ;;  %v2666_v37 = vpop.permute.xlu0 %2665 }
0x11ca   : > { %2672 = vst.msk [vmem:[#allocation3] sm:$0xff] %vm2671_vm11, %v2666_v37 }
0x11d0   : > { %v2675_v38 = vld [vmem:[#allocation3 + $0x8] sm:$0xff] }
0x11d1   : > { %v2674_v40 = vld [vmem:[#allocation3] sm:$0xff] }
0x11d2   : > { %v2676_v42 = vpack.c.bf16 %v2675_v38, %v2674_v40 }
0x11d4   : > { %4195 = vmatmul.mubr.bf16.vlgmr.msra.gmra.mrb[16].mxu1 %v2676_v42 }
0x11d5   : > { %3122 = vmatprep.mubr.bf16.mxu1 %v4829_v4  ;;  %v4624_v4 = vld [vmem:[#allocation2 + $0x8] sm:$0xff]  ;;  %3091 = vmatpush1.bf16.msra.mxu1 %v4474_v49 }
0x11d6   : > { %3092 = vmatprep.subr.bf16.mxu1 %v4482_v25  ;;  %v4524_v49 = vld [vmem:[%s5137_s19 + $0xc8] sm:$0xff]   ;;  %v4527_v25 = vld [vmem:[%s5137_s19 + $0x50] sm:$0xff]  }
0x11d9   : > { %3093 = vmatpush1.bf16.msra.mxu1 %v4480_v32  ;;  %v4529_v32 = vld [vmem:[%s5137_s19 + $0x10] sm:$0xff]  }
0x11da   : > { %3094 = vmatprep.subr.bf16.mxu1 %v4488_v3  ;;  %v4539_v3 = vld [vmem:[%s5137_s19 + $0x68] sm:$0xff]  }
0x11dd   : > { %3095 = vmatpush1.bf16.msra.mxu1 %v4486_v6  ;;  %v4541_v6 = vld [vmem:[%s5137_s19 + $0x28] sm:$0xff]  }
0x11de   : > { %3096 = vmatprep.subr.bf16.mxu1 %v4494_v8  ;;  %v4543_v8 = vld [vmem:[%s5137_s19 + $0x70] sm:$0xff]  }
0x11e1   : > { %3097 = vmatpush1.bf16.msra.mxu1 %v4492_v10  ;;  %v4545_v10 = vld [vmem:[%s5137_s19 + $0x30] sm:$0xff]  }
0x11e2   : > { %3098 = vmatprep.subr.bf16.mxu1 %v4500_v13  ;;  %v4547_v13 = vld [vmem:[%s5137_s19 + $0x78] sm:$0xff]  }
0x11e5   : > { %3099 = vmatpush1.bf16.msra.mxu1 %v4498_v31  ;;  %v4549_v31 = vld [vmem:[%s5137_s19 + $0x38] sm:$0xff]  }
0x11e6   : > { %3100 = vmatprep.subr.bf16.mxu1 %v4506_v63  ;;  %v2865_v63 = vld [vmem:[%s5169_s10] sm:$0xf] }
0x11e7   : > { %v2878_v16 = vrot.slane %v2865_v63, %v767_v57  ;;  %v2882_v18 = vrot.slane %v2865_v63, %v2881_v0 }
0x11e9   : > { %3101 = vmatpush1.bf16.msra.mxu1 %v4504_v15  ;;  %v2870_v15 = vrot.slane %v2865_v63, %v759_v24 }
0x11ea   : > { %3102 = vmatprep.subr.bf16.mxu1 %v4512_v17  ;;  %v2874_v17 = vrot.slane %v2865_v63, %v763_v26 }
0x11ed   : > { %3103 = vmatpush1.bf16.msra.mxu1 %v4510_v19 }
0x11ee   : > { %3104 = vmatprep.subr.bf16.mxu1 %v4518_v45 }
0x11f1   : > { %3105 = vmatpush1.bf16.msra.mxu1 %v4516_v21 }
0x11f2   : > { %4024 = vmatprep.subr.bf16.mxu1 %v4520_v12 }
0x12a7   : > { %v2782_v43 = vpop.f32.mrb[16].mxu1 }
0x12a8   : > { %v2783_v44 = vadd.f32 %v3834_v29, %v2782_v43  ;;  %v4196_v41 = vpop.f32.mrb[17].mxu1  ;;  %v3843_v43 = vld [vmem:[%s5754_s2] ss:$0 sm:$0xff] }
0x12a9   : > { %v2785_v46 = vpop.f32.mrb[18].mxu1 }
0x12aa   : > { %v2786_v47 = vadd.f32 %v3834_v29, %v2785_v46  ;;  %v4197_v48 = vpop.f32.mrb[19].mxu1  ;;  %v2789_v52 = vadd.f32 %v4623_v51, %v2783_v44 }
0x12ac   : > { %2793 = vadd.xlane.f32.xlu0 %v2789_v52  ;;  %v2790_v53 = vadd.f32 %v4624_v4, %v2786_v47  ;;  %v3844_v47 = vld [vmem:[%s5755_s29] ss:$0 sm:$0xff] }
0x12ad   : > { %v4521_v4 = vld [vmem:[%s5137_s19] sm:$0xff]  }
0x12ae   : > { %2795 = vadd.xlane.f32.xlu1 %v2790_v53 }
0x1339   : > { %v2794_v56 = vpop.xlane.xlu0 %2793 }
0x133a   : > { %v2798_v30 = vmul.f32 0.0078125, %v2794_v56  ;;  %v4530_v56 = vld [vmem:[%s5137_s19 + $0x90] sm:$0xff]  }
0x133b   : > { %v2796_v58 = vpop.xlane.xlu1 %2795 }
0x133c   : > { %v5557_v28 = vsub.f32 %v2789_v52, %v2798_v30  ;;  %v2799_v59 = vmul.f32 0.0078125, %v2796_v58  ;;  %v4531_v30 = vld [vmem:[%s5137_s19 + $0x58] sm:$0xff]  }
0x133d   : > { %v4532_v58 = vld [vmem:[%s5137_s19 + $0xd8] sm:$0xff]  }
0x133e   : > { %v5559_v62 = vsub.f32 %v2790_v53, %v2799_v59  ;;  %v2802_v60 = vmul.f32 %v5557_v28, %v5557_v28  ;;  %v4522_v53 = vld [vmem:[%s5137_s19 + $0x80] sm:$0xff]   ;;  %v4534_v59 = vld [vmem:[%s5137_s19 + $0x98] sm:$0xff]  }
0x1340   : > { %2804 = vadd.xlane.f32.xlu0 %v2802_v60  ;;  %v2803_v61 = vmul.f32 %v5559_v62, %v5559_v62  ;;  %v4536_v60 = vld [vmem:[%s5137_s19 + $0xe0] sm:$0xff]  }
0x1344   : > { %2806 = vadd.xlane.f32.xlu0 %v2803_v61  ;;  %v4537_v61 = vld [vmem:[%s5137_s19 + $0x20] sm:$0xff]  }
0x13cd   : > { %v2805_v34 = vpop.xlane.xlu0 %2804 }
0x13ce   : > { %v2808_v35 = vmul.f32 0.0078125, %v2805_v34 }
0x13d0   : > { %v2810_v36 = vadd.f32 1e-05, %v2808_v35 }
0x13d1   : > { %v2807_v37 = vpop.xlane.xlu0 %2806 }
0x13d2   : > { %4615 = vrsqrt.f32 %v2810_v36  ;;  %v2809_v38 = vmul.f32 0.0078125, %v2807_v37 }
0x13d4   : > { %v2811_v40 = vadd.f32 1e-05, %v2809_v38 }
0x13d6   : > { %4617 = vrsqrt.f32 %v2811_v40 }
0x13dc   : > { %v4616_v42 = vpop.eup %4615 }
0x13dd   : > { %v2814_v29 = vmul.f32 %v4616_v42, %v5557_v28  ;;  %v4533_v28 = vld [vmem:[%s5137_s19 + $0x18] sm:$0xff]  }
0x13df   : > { %v2822_v46 = vmul.f32 %v3843_v43, %v2814_v29 }
0x13e0   : > { %v4618_v44 = vpop.eup %4617 }
0x13e1   : > { %v2815_v41 = vmul.f32 %v4618_v44, %v5559_v62  ;;  %v5603_v51 = vadd.f32 %v3844_v47, %v2822_v46  ;;  %v4535_v62 = vld [vmem:[%s5137_s19 + $0x60] sm:$0xff]  }
0x13e3   : > { %v2823_v48 = vmul.f32 %v3843_v43, %v2815_v41 }
0x13e5   : > { %v5605_v52 = vadd.f32 %v3844_v47, %v2823_v48 }
0x13e7   : > { %v2832_v39 = vpack.c.bf16 %v5605_v52, %v5603_v51 }
0x13e9   : > { %3080 = vmatmul.mubr.bf16.vlgmr.msra.gmra.mrb[24].mxu0 %v2832_v39  ;;  %3123 = vmatmul.mubr.bf16.vlgmr.msra.gmra.mrb[20].mxu1 %v2832_v39 }
0x13ea   : > { %4003 = vmatpush3.bf16.msra.mxu0 %v4521_v4  ;;  %4025 = vmatpush3.bf16.msra.mxu1 %v4522_v53 }
0x13eb   : > { %4004 = vmatprep.subr.bf16.mxu0 %v4523_v54  ;;  %4026 = vmatprep.subr.bf16.mxu1 %v4524_v49 }
0x13ee   : > { %4005 = vmatpush3.bf16.msra.mxu0 %v4525_v50  ;;  %4027 = vmatpush3.bf16.msra.mxu1 %v4526_v2  ;;  %v3877_v50 = vld [vmem:[%s702_s22] ss:$0 sm:$0xff] }
0x13ef   : > { %4006 = vmatprep.subr.bf16.mxu0 %v4527_v25  ;;  %4028 = vmatprep.subr.bf16.mxu1 %v4528_v55 }
0x13f2   : > { %4007 = vmatpush3.bf16.msra.mxu0 %v4529_v32  ;;  %4029 = vmatpush3.bf16.msra.mxu1 %v4530_v56 }
0x13f3   : > { %4008 = vmatprep.subr.bf16.mxu0 %v4531_v30  ;;  %4030 = vmatprep.subr.bf16.mxu1 %v4532_v58 }
0x13f6   : > { %4009 = vmatpush3.bf16.msra.mxu0 %v4533_v28  ;;  %4031 = vmatpush3.bf16.msra.mxu1 %v4534_v59 }
0x13f7   : > { %4010 = vmatprep.subr.bf16.mxu0 %v4535_v62  ;;  %4032 = vmatprep.subr.bf16.mxu1 %v4536_v60 }
0x13fa   : > { %4011 = vmatpush3.bf16.msra.mxu0 %v4537_v61  ;;  %4033 = vmatpush3.bf16.msra.mxu1 %v4538_v1 }
0x13fb   : > { %4012 = vmatprep.subr.bf16.mxu0 %v4539_v3  ;;  %4034 = vmatprep.subr.bf16.mxu1 %v4540_v5 }
0x13fe   : > { %4013 = vmatpush3.bf16.msra.mxu0 %v4541_v6  ;;  %4035 = vmatpush3.bf16.msra.mxu1 %v4542_v7 }
0x13ff   : > { %4014 = vmatprep.subr.bf16.mxu0 %v4543_v8  ;;  %4036 = vmatprep.subr.bf16.mxu1 %v4544_v9 }
0x1402   : > { %4015 = vmatpush3.bf16.msra.mxu0 %v4545_v10  ;;  %4037 = vmatpush3.bf16.msra.mxu1 %v4546_v11 }
0x1403   : > { %4016 = vmatprep.subr.bf16.mxu0 %v4547_v13  ;;  %4038 = vmatprep.subr.bf16.mxu1 %v4548_v27 }
0x1406   : > { %4017 = vmatpush3.bf16.msra.mxu0 %v4549_v31  ;;  %4039 = vmatpush3.bf16.msra.mxu1 %v4550_v14 }
0x14bc   : > { %v3081_v19 = vpop.f32.mrb[24].mxu0  ;;  %v3124_v20 = vpop.f32.mrb[20].mxu1 }
0x14bd   : > { %v3082_v33 = vadd.f32 %v3081_v19, %v2870_v15  ;;  %v3125_v21 = vadd.f32 %v3124_v20, %v2878_v16  ;;  %v3083_v45 = vpop.f32.mrb[25].mxu0  ;;  %v3126_v22 = vpop.f32.mrb[21].mxu1  ;;  %v3911_v20 = vld [vmem:[%s708_s23] ss:$0 sm:$0xff] }
0x14be   : > { %v3084_v12 = vadd.f32 %v3083_v45, %v2874_v17  ;;  %v3127_v34 = vadd.f32 %v3126_v22, %v2882_v18  ;;  %v3085_v35 = vpop.f32.mrb[26].mxu0  ;;  %v3128_v36 = vpop.f32.mrb[22].mxu1 }
0x14bf   : > { %v3086_v37 = vadd.f32 %v3085_v35, %v2870_v15  ;;  %v3129_v38 = vadd.f32 %v3128_v36, %v2878_v16  ;;  %v3087_v24 = vpop.f32.mrb[27].mxu0  ;;  %v3130_v40 = vpop.f32.mrb[23].mxu1  ;;  %v3133_v29 = vmax.f32 %v3082_v33, 0.0  ;;  %v3135_v23 = vmax.f32 %v3125_v21, 0.0 }
0x14c0   : > { %v3088_v42 = vadd.f32 %v3087_v24, %v2874_v17  ;;  %v3131_v57 = vadd.f32 %v3130_v40, %v2882_v18  ;;  %v3134_v44 = vmax.f32 %v3084_v12, 0.0  ;;  %v3136_v41 = vmax.f32 %v3127_v34, 0.0  ;;  %v3910_v17 = vld [vmem:[%s705_s14] ss:$0 sm:$0xff] }
0x14c1   : > { %v3137_v26 = vmax.f32 %v3086_v37, 0.0  ;;  %v3139_v43 = vmax.f32 %v3129_v38, 0.0 }
0x14c2   : > { %v3138_v46 = vmax.f32 %v3088_v42, 0.0  ;;  %v3140_v47 = vmax.f32 %v3131_v57, 0.0 }
0x14c3   : > { %v3141_v48 = vpack.c.bf16 %v3137_v26, %v3133_v29  ;;  %v3143_v4 = vpack.c.bf16 %v3139_v43, %v3135_v23 }
0x14c4   : > { %v3142_v53 = vpack.c.bf16 %v3138_v46, %v3134_v44  ;;  %v3144_v39 = vpack.c.bf16 %v3140_v47, %v3136_v41 }
0x14c6   : > { %3440 = vmatprep.mubr.bf16.mxu0 %v3142_v53  ;;  %3481 = vmatprep.mubr.bf16.mxu1 %v3144_v39 }
0x14c7   : > { %3441 = vmatmul.mubr.bf16.vlgmr.msra.gmra.mrb[28].mxu0 %v3141_v48  ;;  %3482 = vmatmul.mubr.bf16.vlgmr.msra.gmra.mrb[24].mxu1 %v3143_v4 }
0x159a   : > { %v4018_v54 = vpop.f32.mrb[28].mxu0  ;;  %v4040_v49 = vpop.f32.mrb[24].mxu1 }
0x159b   : > { %v4019_v2 = vpop.f32.mrb[29].mxu0  ;;  %v4041_v25 = vpop.f32.mrb[25].mxu1 }
0x159c   : > { %v4020_v55 = vadd.f32 %v4019_v2, %v4018_v54  ;;  %v4042_v32 = vadd.f32 %v4041_v25, %v4040_v49  ;;  %v4021_v56 = vpop.f32.mrb[30].mxu0  ;;  %v4043_v30 = vpop.f32.mrb[26].mxu1 }
0x159d   : > { %v4022_v58 = vpop.f32.mrb[31].mxu0  ;;  %v4044_v28 = vpop.f32.mrb[27].mxu1 }
0x159e   : > { %v3443_v59 = vadd.f32 %v4020_v55, %v3877_v50  ;;  %v4023_v62 = vadd.f32 %v4022_v58, %v4021_v56  ;;  %v4045_v60 = vadd.f32 %v4044_v28, %v4043_v30 }
0x15a0   : > { %v3484_v61 = vadd.f32 %v4042_v32, %v3443_v59  ;;  %v3446_v1 = vadd.f32 %v4023_v62, %v3877_v50 }
0x15a2   : > { %v3487_v3 = vadd.f32 %v4045_v60, %v3446_v1  ;;  %v3490_v5 = vadd.f32 %v3484_v61, %v5603_v51 }
0x15a4   : > { %3494 = vadd.xlane.f32.xlu0 %v3490_v5  ;;  %v3491_v6 = vadd.f32 %v3487_v3, %v5605_v52 }
0x15a6   : > { %3496 = vadd.xlane.f32.xlu1 %v3491_v6 }
0x1631   : > { %v3495_v7 = vpop.xlane.xlu0 %3494 }
0x1632   : > { %v3498_v8 = vmul.f32 0.0078125, %v3495_v7 }
0x1633   : > { %v3497_v9 = vpop.xlane.xlu1 %3496 }
0x1634   : > { %v3500_v10 = vsub.f32 %v3490_v5, %v3498_v8  ;;  %v3499_v11 = vmul.f32 0.0078125, %v3497_v9 }
0x1636   : > { %v3501_v13 = vsub.f32 %v3491_v6, %v3499_v11  ;;  %v3502_v27 = vmul.f32 %v3500_v10, %v3500_v10 }
0x1638   : > { %3504 = vadd.xlane.f32.xlu0 %v3502_v27  ;;  %v3503_v31 = vmul.f32 %v3501_v13, %v3501_v13 }
0x163a   : > { %3506 = vadd.xlane.f32.xlu1 %v3503_v31 }
0x16c5   : > { %v3505_v14 = vpop.xlane.xlu0 %3504 }
0x16c6   : > { %v3508_v63 = vmul.f32 0.0078125, %v3505_v14 }
0x16c7   : > { %v3507_v0 = vpop.xlane.xlu1 %3506 }
0x16c8   : > { %v3510_v51 = vadd.f32 1e-05, %v3508_v63  ;;  %v3509_v15 = vmul.f32 0.0078125, %v3507_v0 }
0x16ca   : > { %4619 = vrsqrt.f32 %v3510_v51  ;;  %v3511_v52 = vadd.f32 1e-05, %v3509_v15 }
0x16cc   : > { %4621 = vrsqrt.f32 %v3511_v52 }
0x16d4   : > { %v4620_v16 = vpop.eup %4619 }
0x16d5   : > { %v3514_v18 = vmul.f32 %v4620_v16, %v3500_v10 }
0x16d6   : > { %v4622_v19 = vpop.eup %4621 }
0x16d7   : > { %v3522_v33 = vmul.f32 %v3910_v17, %v3514_v18  ;;  %v3515_v21 = vmul.f32 %v4622_v19, %v3501_v13  ;;  %3537 = sbr.rel (%p3912_p5) target bundleno = 5854 (0x16de), region = 100 }
0x16d9   : > { %v3530_v45 = vadd.f32 %v3911_v20, %v3522_v33  ;;  %v3523_v22 = vmul.f32 %v3910_v17, %v3515_v21 }
0x16db   : > { %3532 = vst [vmem:[#allocation2] sm:$0xff] %v3530_v45  ;;  %v3531_v12 = vadd.f32 %v3911_v20, %v3523_v22  ;;  %3538 = vst [vmem:[#allocation12] sm:$0xff] (!%p3912_p5), %v3530_v45 }
0x16dd   : > { %3533 = vst [vmem:[#allocation2 + $0x8] sm:$0xff] %v3531_v12  ;;  %3539 = vst [vmem:[#allocation12 + $0x8] sm:$0xff] (!%p3912_p5), %v3531_v12 }
0x16de PF: > { %p4308_p6 = scmp.eq.s32.totalorder %s4936_s17, 3  ;;  %s4839_s14 = smov [#allocation12]  }
0x16df   : > { %s3546_s25 = sshll.u32 %s4839_s14, 4  ;;  %s3547_s25 = int_to_ptr.vmem [resolvable:$true] %s3546_s25 }
0x16e0   : > { %s4745_s28 = scalar_lea.vmem %s3547_s25, 256  ;;  %p4752_p13 = scmp.lt.s32.totalorder %s3547_s25, %s3547_s25 }
0x16e1   : > { %p4746_p1 = scmp.ne.s32.totalorder %s3547_s25, %s4745_s28  ;;  %p4753_p9 = scmp.lt.s32.totalorder %s4745_s28, %s4745_s28 }
0x16e3   : > { %p4747_p4 = pnand %p4746_p1, %p4308_p6  ;;  %p4754_p0 = por %p4753_p9, %p4752_p13 }
0x16e5   : > { %p4748_p11 = pneg %p4747_p4 }
0x16e7   : > { %p4755_p12 = pnand %p4754_p0, %p4748_p11 }
0x16e9   : > { %4758 = shalt.err (!%p4755_p12)
}
0x16ea   : > { %s5757_s16 = sld [smem:[#allocation27_spill]] }
0x16f0   : > { %s5758_s21 = smov %s5757_s16  ;;  %s4759_s20 = scalar_lea.hbm %s5757_s16, 256 }
0x16f1   : > { %p4760_p2 = scmp.ne.s32.totalorder %s5758_s21, %s4759_s20  ;;  %p4765_p8 = scmp.lt.u32.totalorder %s4759_s20, %s5758_s21 }
0x16f3   : > { %p4761_p10 = pnand %p4760_p2, %p4308_p6 }
0x16f5   : > { %p4762_p7 = pneg %p4761_p10 }
0x16f7   : > { %p4767_p3 = pnand %p4765_p8, %p4762_p7 }
0x16f9   : > { %4770 = shalt.err (!%p4767_p3)
}
0x16fa   : > { %s4840_s29 = smov 128   ;;  %s4841_s10 = smov 8  }
0x16fb   : > { %4291 = dma.vmem_to_hbm [thread:$0]  (%p4308_p6), %s3547_s25, 256, %s5758_s21, [#allocation6], %s4840_s29, %s4840_s29, %s4841_s10  }
0x16fc   : > { %4800 = dma.done.wait (%p4308_p6), [#allocation6], 256  }
0x16fd   : > { %4802 = vsyncadd (%p4308_p6), [#allocation6], 4294967040 }
0x16fe PF: > { %s5759_s16 = sld [smem:[#allocation18_spill]]  ;;  %s5760_s15 = sld [smem:[#allocation17_spill]] }
0x16ff   : > { %s5761_s0 = sld [smem:[#allocation19_spill]]  ;;  %s5762_s29 = smov %s4809_s30 }
0x1704   : > { %p31_p5 = scmp.ge.s32.totalorder %s5759_s16, 6   ;;  %s5763_s30 = smov %s5760_s15 }
0x1705   : > { %s5764_s15 = smov %s5761_s0 }
0x1706   :  { %33 = sbr.rel (!%p31_p5) target bundleno = 17 (0x11), region = 182 }
0x170d   :  { %3562 = vsyncpa [#allocation5], 1 }
0x170e   :  { %3564 = vsyncpa [#allocation5 + $0x1], 1 }
0x170f   :  { %3565 = vsyncpa [#allocation8], 1 }
0x1710   :  { %3567 = vsyncpa [#allocation8 + $0x1], 1 }
0x1711   :  { %3568 = vsyncpa [#allocation11], 1 }
0x1712   :  { %3570 = vsyncpa [#allocation11 + $0x1], 1 }
0x1713   :  { %3571 = vsyncpa [#allocation6], 1 }
0x1714   :  { %3573 = vsyncpa [#allocation6 + $0x1], 1 }

</bundles_post_ra>
